<compile_context>
chip_gen: v7x
topology: tpu7x:2x2x1
jax: 0.10.0
libtpu: 0.0.40
codegen_flags: <defaults>
</compile_context>

<pallas_src>
import functools

import jax
import jax.numpy as jnp
import numpy as np
from jax.experimental import pallas as pl
from jax.experimental.pallas import tpu as pltpu


# ----------------------------------------------------------------------------
# Kernel 1: 3x3 conv (stride 1, pad 1, no bias) + fused BN partial statistics.
# ----------------------------------------------------------------------------
def _conv3x3_stats_kernel(xf_ref, w2_ref, cmask_ref,
                          y_ref, s1_ref, s2_ref,
                          patches_ref, *, W, L, NB):
    # xf_ref   : (NB, Cin, FLAT) bf16 -- NB images, each vertically zero-padded
    #            and row-major flattened; FLAT = (H+2)*W + 2 (one extra zero at
    #            each end so every tap window stays in-bounds).
    # w2_ref   : (Cout, 9*Cin) bf16   -- conv weight with the 3x3 taps folded
    #            into the contraction dim, k = kh*3 + kw outer, ci inner.
    # cmask_ref: (3, L) bf16          -- column-validity mask per kw (left/right
    #            zero padding on the flattened spatial axis).
    # y_ref    : (NB, Cout, L) f32    -- conv output, spatial on the lane axis.
    # s1/s2_ref: (1, Cout, 1) f32     -- per-block per-channel sum / sum-of-sq.
    # patches_ref: VMEM (9*Cin, NB*L) bf16 scratch holding the im2col-K matrix.
    cin = xf_ref.shape[1]
    cm = cmask_ref[...]                       # (3, L)

    for nb in range(NB):
        xf = xf_ref[nb]                       # (Cin, FLAT)
        for kh in range(3):
            for kw in range(3):
                k = kh * 3 + kw
                s = kh * W + kw               # static lane offset of this tap
                tap = xf[:, s:s + L]          # (Cin, L) -- in-VMEM lane shift
                if kw != 1:                   # kw == 1 is always column-valid
                    tap = tap * cm[kw:kw + 1, :]
                patches_ref[k * cin:(k + 1) * cin, nb * L:(nb + 1) * L] = tap

    # Single MXU matmul: (Cout, 9*Cin) @ (9*Cin, NB*L) -> (Cout, NB*L), f32 acc.
    y = jnp.dot(w2_ref[...], patches_ref[...],
                preferred_element_type=jnp.float32)
    for nb in range(NB):                      # lane-aligned (L % 128 == 0) splits
        y_ref[nb] = y[:, nb * L:(nb + 1) * L]

    # Fused BatchNorm partial statistics (cross-lane XLU reductions).
    s1_ref[0] = jnp.sum(y, axis=-1, keepdims=True)
    s2_ref[0] = jnp.sum(y * y, axis=-1, keepdims=True)


# ----------------------------------------------------------------------------
# Kernel 2: per-channel normalize + affine + ReLU (BN folded to scale/shift).
# ----------------------------------------------------------------------------
def _bn_relu_kernel(y_ref, scale_ref, shift_ref, o_ref):
    # y_ref: (1, C, TL) f32; scale/shift: (C, 1) f32; o_ref: (1, C, TL) f32.
    y = y_ref[0]
    o_ref[0] = jnp.maximum(y * scale_ref[...] + shift_ref[...], 0.0)


def _pick_images_per_block(N, L, max_cols=2048):
    """Largest divisor of N such that the im2col slab stays <= max_cols lanes."""
    nb = 1
    for cand in range(1, N + 1):
        if N % cand == 0 and cand * L <= max_cols:
            nb = cand
    return nb


def _conv_bn_relu_layer(x, w, gamma, beta, *, eps=1e-5):
    """One ConvODEFunc layer: Conv2d(k3,p1,s1,bias=False) -> BN(train) -> ReLU."""
    N, Cin, H, W = x.shape
    Cout = w.shape[0]
    L = H * W
    FLAT = (H + 2) * W + 2
    NB = _pick_images_per_block(N, L)
    G = N // NB

    # ---- layout glue (plain JAX, cheap): vertical zero-pad rows, flatten rows,
    #      one extra zero element at each end, bf16 cast for the MXU.
    xv = jnp.pad(x, ((0, 0), (0, 0), (1, 1), (0, 0)))                 # (N,Cin,H+2,W)
    xf = xv.reshape(N, Cin, (H + 2) * W)
    xf = jnp.pad(xf, ((0, 0), (0, 0), (1, 1))).astype(jnp.bfloat16)   # (N,Cin,FLAT)

    # Weight with taps folded into K: W2[co, (kh*3+kw)*Cin + ci] = w[co,ci,kh,kw].
    w2 = jnp.transpose(w, (0, 2, 3, 1)).reshape(Cout, 9 * Cin).astype(jnp.bfloat16)

    # Column-validity masks per kw (left / centre / right tap).
    col = jnp.arange(L, dtype=jnp.int32) % W
    cmask = jnp.stack([col > 0,
                       jnp.ones((L,), jnp.bool_),
                       col < W - 1], axis=0).astype(jnp.bfloat16)     # (3, L)

    y, ssum, ssq = pl.pallas_call(
        functools.partial(_conv3x3_stats_kernel, W=W, L=L, NB=NB),
        out_shape=(jax.ShapeDtypeStruct((N, Cout, L), jnp.float32),
                   jax.ShapeDtypeStruct((G, Cout, 1), jnp.float32),
                   jax.ShapeDtypeStruct((G, Cout, 1), jnp.float32)),
        grid=(G,),
        in_specs=[pl.BlockSpec((NB, Cin, FLAT), lambda g: (g, 0, 0)),
                  pl.BlockSpec((Cout, 9 * Cin), lambda g: (0, 0)),
                  pl.BlockSpec((3, L), lambda g: (0, 0))],
        out_specs=(pl.BlockSpec((NB, Cout, L), lambda g: (g, 0, 0)),
                   pl.BlockSpec((1, Cout, 1), lambda g: (g, 0, 0)),
                   pl.BlockSpec((1, Cout, 1), lambda g: (g, 0, 0))),
        scratch_shapes=[pltpu.VMEM((9 * Cin, NB * L), jnp.bfloat16)],
        compiler_params=pltpu.CompilerParams(
            dimension_semantics=("parallel",),
            vmem_limit_bytes=32 * 1024 * 1024),
    )(xf, w2, cmask)
    # TODO(synk): for production H*W (and v7x's 64 MiB VMEM) add a row-band grid
    # axis with a 2-row halo instead of whole images per conv grid step.

    # BatchNorm2d training-mode batch statistics from the fused partial sums
    # (only 2*G*Cout scalars cross HBM here; y is never re-read for the stats).
    count = float(N * L)
    s1 = jnp.sum(ssum[:, :, 0], axis=0)                 # (Cout,)
    s2 = jnp.sum(ssq[:, :, 0], axis=0)                  # (Cout,)
    mean = s1 / count
    var = jnp.maximum(s2 / count - mean * mean, 0.0)    # biased var (torch fwd)
    inv = gamma / jnp.sqrt(var + eps)
    scale = inv.reshape(Cout, 1)
    shift = (beta - mean * inv).reshape(Cout, 1)

    # Spatially tiled normalize + affine + ReLU (lane-dense blocks).
    TL = L
    for cand in (2048, 1024, 512, 256, 128):
        if L % cand == 0:
            TL = cand
            break
    out = pl.pallas_call(
        _bn_relu_kernel,
        out_shape=jax.ShapeDtypeStruct((N, Cout, L), jnp.float32),
        grid=(N, L // TL),
        in_specs=[pl.BlockSpec((1, Cout, TL), lambda n, t: (n, 0, t)),
                  pl.BlockSpec((Cout, 1), lambda n, t: (0, 0)),
                  pl.BlockSpec((Cout, 1), lambda n, t: (0, 0))],
        out_specs=pl.BlockSpec((1, Cout, TL), lambda n, t: (n, 0, t)),
        compiler_params=pltpu.CompilerParams(
            dimension_semantics=("parallel", "parallel"),
            vmem_limit_bytes=32 * 1024 * 1024),
    )(y, scale, shift)

    return out.reshape(N, Cout, H, W)


def conv_ode_func_forward(t, x, params, eps=1e-5):
    """Forward of ConvODEFunc(channels, relu_type='ReLU', relu_last=True, k=3).

    `t` is ignored by the block (matches the PyTorch module); BatchNorm uses
    training-mode batch statistics (fresh nn.Module default).
    """
    # TODO(synk): the Python-side `self.nfe += 1` counter is stateful and has
    # no place in a pure JAX forward; it is omitted.
    del t
    for (w, gamma, beta) in params:
        x = _conv_bn_relu_layer(x, w, gamma, beta, eps=eps)
    return x


# ----------------------------------------------------------------------------
# Pure-JAX reference (same bf16 conv-input casting) for the sanity check.
# ----------------------------------------------------------------------------
def _reference(t, x, params, eps=1e-5):
    del t
    for (w, gamma, beta) in params:
        Cout = w.shape[0]
        y = jax.lax.conv_general_dilated(
            x.astype(jnp.bfloat16), w.astype(jnp.bfloat16),
            window_strides=(1, 1), padding=((1, 1), (1, 1)),
            dimension_numbers=("NCHW", "OIHW", "NCHW"),
            preferred_element_type=jnp.float32)
        mean = y.mean(axis=(0, 2, 3), keepdims=True)
        var = jnp.square(y - mean).mean(axis=(0, 2, 3), keepdims=True)
        yn = (y - mean) / jnp.sqrt(var + eps)
        yn = yn * gamma.reshape(1, Cout, 1, 1) + beta.reshape(1, Cout, 1, 1)
        x = jnp.maximum(yn, 0.0)
    return x


if __name__ == "__main__":
    key = jax.random.PRNGKey(0)
    N, H, W = 2, 16, 16
    channels = (4, 8, 4)        # ConvODEFunc(channels=(4, 8, 4)): two conv layers

    n_layers = len(channels) - 1
    keys = jax.random.split(key, 3 * n_layers + 1)
    params = []
    for i in range(n_layers):
        kw_, kg, kb = keys[3 * i], keys[3 * i + 1], keys[3 * i + 2]
        w = 0.1 * jax.random.normal(kw_, (channels[i + 1], channels[i], 3, 3),
                                    jnp.float32)
        gamma = 1.0 + 0.1 * jax.random.normal(kg, (channels[i + 1],), jnp.float32)
        beta = 0.1 * jax.random.normal(kb, (channels[i + 1],), jnp.float32)
        params.append((w, gamma, beta))

    x = jax.random.normal(keys[-1], (N, channels[0], H, W), jnp.float32)
    t = jnp.float32(0.0)

    fwd = jax.jit(conv_ode_func_forward)
    out = jax.block_until_ready(fwd(t, x, params))
    assert out.shape == (N, channels[-1], H, W), out.shape

    ref = jax.block_until_ready(_reference(t, x, params))
    # Both paths cast the conv inputs to bf16; the inter-layer activation may
    # re-round by one bf16 ulp, hence the slightly loose tolerance.
    np.testing.assert_allclose(np.asarray(out), np.asarray(ref),
                               rtol=5e-3, atol=5e-3)
    print("KERNEL_OK")
</pallas_src>

<mosaic_0001>
module attributes {stable_mosaic.version = 11 : i64} {
  func.func @_bn_relu_kernel(%arg0: i32, %arg1: i32, %arg2: memref<1x8x256xf32, #tpu.memory_space<vmem>>, %arg3: memref<8x1xf32, #tpu.memory_space<vmem>>, %arg4: memref<8x1xf32, #tpu.memory_space<vmem>>, %arg5: memref<1x8x256xf32, #tpu.memory_space<vmem>>) attributes {dimension_semantics = [#tpu.dimension_semantics<parallel>, #tpu.dimension_semantics<parallel>], iteration_bounds = array<i64: 2, 1>, scalar_prefetch = 0 : i64, scratch_operands = 0 : i64, tpu.core_type = #tpu.core_type<tc>, window_params = [{transform_indices = @transform_0, window_bounds = array<i64: 1, 8, 256>}, {pipeline_mode = #tpu.pipeline_mode<synchronous>, transform_indices = @transform_1, window_bounds = array<i64: 8, 1>}, {pipeline_mode = #tpu.pipeline_mode<synchronous>, transform_indices = @transform_2, window_bounds = array<i64: 8, 1>}, {transform_indices = @transform_3, window_bounds = array<i64: 1, 8, 256>}]} {
    %c0 = arith.constant 0 : index
    %c0_0 = arith.constant 0 : index
    %c0_1 = arith.constant 0 : index
    %0 = vector.load %arg2[%c0, %c0_0, %c0_1] : memref<1x8x256xf32, #tpu.memory_space<vmem>>, vector<1x8x256xf32>
    %1 = vector.shape_cast %0 : vector<1x8x256xf32> to vector<8x256xf32>
    %c0_2 = arith.constant 0 : index
    %c0_3 = arith.constant 0 : index
    %2 = vector.load %arg3[%c0_2, %c0_3] : memref<8x1xf32, #tpu.memory_space<vmem>>, vector<8x1xf32>
    %3 = vector.broadcast %2 : vector<8x1xf32> to vector<8x256xf32>
    %4 = arith.mulf %1, %3 : vector<8x256xf32>
    %c0_4 = arith.constant 0 : index
    %c0_5 = arith.constant 0 : index
    %5 = vector.load %arg4[%c0_4, %c0_5] : memref<8x1xf32, #tpu.memory_space<vmem>>, vector<8x1xf32>
    %6 = vector.broadcast %5 : vector<8x1xf32> to vector<8x256xf32>
    %7 = arith.addf %4, %6 : vector<8x256xf32>
    %cst = arith.constant 0.000000e+00 : f32
    %8 = vector.broadcast %cst : f32 to vector<8x256xf32>
    %9 = arith.maximumf %7, %8 : vector<8x256xf32>
    %c0_6 = arith.constant 0 : index
    %c0_7 = arith.constant 0 : index
    %c0_8 = arith.constant 0 : index
    %10 = vector.load %arg5[%c0_6, %c0_7, %c0_8] : memref<1x8x256xf32, #tpu.memory_space<vmem>>, vector<1x8x256xf32>
    %11 = vector.shape_cast %10 : vector<1x8x256xf32> to vector<8x256xf32>
    %12 = vector.shape_cast %9 : vector<8x256xf32> to vector<1x8x256xf32>
    tpu.vector_store %arg5[%c0_6, %c0_7, %c0_8], %12 {strides = array<i32>} : memref<1x8x256xf32, #tpu.memory_space<vmem>>, vector<1x8x256xf32>,
    return
  }
  func.func @transform_0(%arg0: i32, %arg1: i32) -> (i32, i32, i32) {
    %c0_i32 = arith.constant 0 : i32
    %c0_i32_0 = arith.constant 0 : i32
    return %arg0, %c0_i32, %arg1 : i32, i32, i32
  }
  func.func @transform_1(%arg0: i32, %arg1: i32) -> (i32, i32) {
    %c0_i32 = arith.constant 0 : i32
    %c0_i32_0 = arith.constant 0 : i32
    %c0_i32_1 = arith.constant 0 : i32
    return %c0_i32, %c0_i32_0 : i32, i32
  }
  func.func @transform_2(%arg0: i32, %arg1: i32) -> (i32, i32) {
    %c0_i32 = arith.constant 0 : i32
    %c0_i32_0 = arith.constant 0 : i32
    %c0_i32_1 = arith.constant 0 : i32
    return %c0_i32, %c0_i32_0 : i32, i32
  }
  func.func @transform_3(%arg0: i32, %arg1: i32) -> (i32, i32, i32) {
    %c0_i32 = arith.constant 0 : i32
    %c0_i32_0 = arith.constant 0 : i32
    return %arg0, %c0_i32, %arg1 : i32, i32, i32
  }
}

module attributes {stable_mosaic.version = 11 : i64} {
  func.func @_conv3x3_stats_kernel(%arg0: i32, %arg1: memref<2x4x290xbf16, #tpu.memory_space<vmem>>, %arg2: memref<8x36xbf16, #tpu.memory_space<vmem>>, %arg3: memref<3x256xbf16, #tpu.memory_space<vmem>>, %arg4: memref<2x8x256xf32, #tpu.memory_space<vmem>>, %arg5: memref<1x8x1xf32, #tpu.memory_space<vmem>>, %arg6: memref<1x8x1xf32, #tpu.memory_space<vmem>>, %arg7: memref<36x512xbf16, #tpu.memory_space<vmem>>) attributes {dimension_semantics = [#tpu.dimension_semantics<parallel>], iteration_bounds = array<i64: 1>, scalar_prefetch = 0 : i64, scratch_operands = 1 : i64, tpu.core_type = #tpu.core_type<tc>, window_params = [{transform_indices = @transform_0, window_bounds = array<i64: 2, 4, 290>}, {pipeline_mode = #tpu.pipeline_mode<synchronous>, transform_indices = @transform_1, window_bounds = array<i64: 8, 36>}, {pipeline_mode = #tpu.pipeline_mode<synchronous>, transform_indices = @transform_2, window_bounds = array<i64: 3, 256>}, {transform_indices = @transform_3, window_bounds = array<i64: 2, 8, 256>}, {transform_indices = @transform_4, window_bounds = array<i64: 1, 8, 1>}, {transform_indices = @transform_5, window_bounds = array<i64: 1, 8, 1>}]} {
    %c0 = arith.constant 0 : index
    %c0_0 = arith.constant 0 : index
    %0 = vector.load %arg3[%c0, %c0_0] : memref<3x256xbf16, #tpu.memory_space<vmem>>, vector<3x256xbf16>
    %c0_1 = arith.constant 0 : index
    %c0_2 = arith.constant 0 : index
    %c0_3 = arith.constant 0 : index
    %1 = vector.load %arg1[%c0_1, %c0_2, %c0_3] : memref<2x4x290xbf16, #tpu.memory_space<vmem>>, vector<1x4x290xbf16>
    %2 = vector.shape_cast %1 : vector<1x4x290xbf16> to vector<4x290xbf16>
    %3 = vector.extract_strided_slice %2 {offsets = [0, 0], sizes = [4, 256], strides = [1, 1]} : vector<4x290xbf16> to vector<4x256xbf16>
    %4 = vector.extract_strided_slice %0 {offsets = [0, 0], sizes = [1, 256], strides = [1, 1]} : vector<3x256xbf16> to vector<1x256xbf16>
    %5 = vector.broadcast %4 : vector<1x256xbf16> to vector<4x256xbf16>
    %6 = arith.mulf %3, %5 : vector<4x256xbf16>
    %c0_4 = arith.constant 0 : index
    %c0_5 = arith.constant 0 : index
    %7 = vector.load %arg7[%c0_4, %c0_5] : memref<36x512xbf16, #tpu.memory_space<vmem>>, vector<4x256xbf16>
    tpu.vector_store %arg7[%c0_4, %c0_5], %6 {strides = array<i32>} : memref<36x512xbf16, #tpu.memory_space<vmem>>, vector<4x256xbf16>,
    %8 = vector.extract_strided_slice %2 {offsets = [0, 1], sizes = [4, 256], strides = [1, 1]} : vector<4x290xbf16> to vector<4x256xbf16>
    %c4 = arith.constant 4 : index
    %c0_6 = arith.constant 0 : index
    %9 = vector.load %arg7[%c4, %c0_6] : memref<36x512xbf16, #tpu.memory_space<vmem>>, vector<4x256xbf16>
    tpu.vector_store %arg7[%c4, %c0_6], %8 {strides = array<i32>} : memref<36x512xbf16, #tpu.memory_space<vmem>>, vector<4x256xbf16>,
    %10 = vector.extract_strided_slice %2 {offsets = [0, 2], sizes = [4, 256], strides = [1, 1]} : vector<4x290xbf16> to vector<4x256xbf16>
    %11 = vector.extract_strided_slice %0 {offsets = [2, 0], sizes = [1, 256], strides = [1, 1]} : vector<3x256xbf16> to vector<1x256xbf16>
    %12 = vector.broadcast %11 : vector<1x256xbf16> to vector<4x256xbf16>
    %13 = arith.mulf %10, %12 : vector<4x256xbf16>
    %c8 = arith.constant 8 : index
    %c0_7 = arith.constant 0 : index
    %14 = vector.load %arg7[%c8, %c0_7] : memref<36x512xbf16, #tpu.memory_space<vmem>>, vector<4x256xbf16>
    tpu.vector_store %arg7[%c8, %c0_7], %13 {strides = array<i32>} : memref<36x512xbf16, #tpu.memory_space<vmem>>, vector<4x256xbf16>,
    %15 = vector.extract_strided_slice %2 {offsets = [0, 16], sizes = [4, 256], strides = [1, 1]} : vector<4x290xbf16> to vector<4x256xbf16>
    %16 = vector.extract_strided_slice %0 {offsets = [0, 0], sizes = [1, 256], strides = [1, 1]} : vector<3x256xbf16> to vector<1x256xbf16>
    %17 = vector.broadcast %16 : vector<1x256xbf16> to vector<4x256xbf16>
    %18 = arith.mulf %15, %17 : vector<4x256xbf16>
    %c12 = arith.constant 12 : index
    %c0_8 = arith.constant 0 : index
    %19 = vector.load %arg7[%c12, %c0_8] : memref<36x512xbf16, #tpu.memory_space<vmem>>, vector<4x256xbf16>
    tpu.vector_store %arg7[%c12, %c0_8], %18 {strides = array<i32>} : memref<36x512xbf16, #tpu.memory_space<vmem>>, vector<4x256xbf16>,
    %20 = vector.extract_strided_slice %2 {offsets = [0, 17], sizes = [4, 256], strides = [1, 1]} : vector<4x290xbf16> to vector<4x256xbf16>
    %c16 = arith.constant 16 : index
    %c0_9 = arith.constant 0 : index
    %21 = vector.load %arg7[%c16, %c0_9] : memref<36x512xbf16, #tpu.memory_space<vmem>>, vector<4x256xbf16>
    tpu.vector_store %arg7[%c16, %c0_9], %20 {strides = array<i32>} : memref<36x512xbf16, #tpu.memory_space<vmem>>, vector<4x256xbf16>,
    %22 = vector.extract_strided_slice %2 {offsets = [0, 18], sizes = [4, 256], strides = [1, 1]} : vector<4x290xbf16> to vector<4x256xbf16>
    %23 = vector.extract_strided_slice %0 {offsets = [2, 0], sizes = [1, 256], strides = [1, 1]} : vector<3x256xbf16> to vector<1x256xbf16>
    %24 = vector.broadcast %23 : vector<1x256xbf16> to vector<4x256xbf16>
    %25 = arith.mulf %22, %24 : vector<4x256xbf16>
    %c20 = arith.constant 20 : index
    %c0_10 = arith.constant 0 : index
    %26 = vector.load %arg7[%c20, %c0_10] : memref<36x512xbf16, #tpu.memory_space<vmem>>, vector<4x256xbf16>
    tpu.vector_store %arg7[%c20, %c0_10], %25 {strides = array<i32>} : memref<36x512xbf16, #tpu.memory_space<vmem>>, vector<4x256xbf16>,
    %27 = vector.extract_strided_slice %2 {offsets = [0, 32], sizes = [4, 256], strides = [1, 1]} : vector<4x290xbf16> to vector<4x256xbf16>
    %28 = vector.extract_strided_slice %0 {offsets = [0, 0], sizes = [1, 256], strides = [1, 1]} : vector<3x256xbf16> to vector<1x256xbf16>
    %29 = vector.broadcast %28 : vector<1x256xbf16> to vector<4x256xbf16>
    %30 = arith.mulf %27, %29 : vector<4x256xbf16>
    %c24 = arith.constant 24 : index
    %c0_11 = arith.constant 0 : index
    %31 = vector.load %arg7[%c24, %c0_11] : memref<36x512xbf16, #tpu.memory_space<vmem>>, vector<4x256xbf16>
    tpu.vector_store %arg7[%c24, %c0_11], %30 {strides = array<i32>} : memref<36x512xbf16, #tpu.memory_space<vmem>>, vector<4x256xbf16>,
    %32 = vector.extract_strided_slice %2 {offsets = [0, 33], sizes = [4, 256], strides = [1, 1]} : vector<4x290xbf16> to vector<4x256xbf16>
    %c28 = arith.constant 28 : index
    %c0_12 = arith.constant 0 : index
    %33 = vector.load %arg7[%c28, %c0_12] : memref<36x512xbf16, #tpu.memory_space<vmem>>, vector<4x256xbf16>
    tpu.vector_store %arg7[%c28, %c0_12], %32 {strides = array<i32>} : memref<36x512xbf16, #tpu.memory_space<vmem>>, vector<4x256xbf16>,
    %34 = vector.extract_strided_slice %2 {offsets = [0, 34], sizes = [4, 256], strides = [1, 1]} : vector<4x290xbf16> to vector<4x256xbf16>
    %35 = vector.extract_strided_slice %0 {offsets = [2, 0], sizes = [1, 256], strides = [1, 1]} : vector<3x256xbf16> to vector<1x256xbf16>
    %36 = vector.broadcast %35 : vector<1x256xbf16> to vector<4x256xbf16>
    %37 = arith.mulf %34, %36 : vector<4x256xbf16>
    %c32 = arith.constant 32 : index
    %c0_13 = arith.constant 0 : index
    %38 = vector.load %arg7[%c32, %c0_13] : memref<36x512xbf16, #tpu.memory_space<vmem>>, vector<4x256xbf16>
    tpu.vector_store %arg7[%c32, %c0_13], %37 {strides = array<i32>} : memref<36x512xbf16, #tpu.memory_space<vmem>>, vector<4x256xbf16>,
    %c1 = arith.constant 1 : index
    %c0_14 = arith.constant 0 : index
    %c0_15 = arith.constant 0 : index
    %39 = vector.load %arg1[%c1, %c0_14, %c0_15] : memref<2x4x290xbf16, #tpu.memory_space<vmem>>, vector<1x4x290xbf16>
    %40 = vector.shape_cast %39 : vector<1x4x290xbf16> to vector<4x290xbf16>
    %41 = vector.extract_strided_slice %40 {offsets = [0, 0], sizes = [4, 256], strides = [1, 1]} : vector<4x290xbf16> to vector<4x256xbf16>
    %42 = vector.extract_strided_slice %0 {offsets = [0, 0], sizes = [1, 256], strides = [1, 1]} : vector<3x256xbf16> to vector<1x256xbf16>
    %43 = vector.broadcast %42 : vector<1x256xbf16> to vector<4x256xbf16>
    %44 = arith.mulf %41, %43 : vector<4x256xbf16>
    %c0_16 = arith.constant 0 : index
    %c256 = arith.constant 256 : index
    %45 = vector.load %arg7[%c0_16, %c256] : memref<36x512xbf16, #tpu.memory_space<vmem>>, vector<4x256xbf16>
    tpu.vector_store %arg7[%c0_16, %c256], %44 {strides = array<i32>} : memref<36x512xbf16, #tpu.memory_space<vmem>>, vector<4x256xbf16>,
    %46 = vector.extract_strided_slice %40 {offsets = [0, 1], sizes = [4, 256], strides = [1, 1]} : vector<4x290xbf16> to vector<4x256xbf16>
    %c4_17 = arith.constant 4 : index
    %c256_18 = arith.constant 256 : index
    %47 = vector.load %arg7[%c4_17, %c256_18] : memref<36x512xbf16, #tpu.memory_space<vmem>>, vector<4x256xbf16>
    tpu.vector_store %arg7[%c4_17, %c256_18], %46 {strides = array<i32>} : memref<36x512xbf16, #tpu.memory_space<vmem>>, vector<4x256xbf16>,
    %48 = vector.extract_strided_slice %40 {offsets = [0, 2], sizes = [4, 256], strides = [1, 1]} : vector<4x290xbf16> to vector<4x256xbf16>
    %49 = vector.extract_strided_slice %0 {offsets = [2, 0], sizes = [1, 256], strides = [1, 1]} : vector<3x256xbf16> to vector<1x256xbf16>
    %50 = vector.broadcast %49 : vector<1x256xbf16> to vector<4x256xbf16>
    %51 = arith.mulf %48, %50 : vector<4x256xbf16>
    %c8_19 = arith.constant 8 : index
    %c256_20 = arith.constant 256 : index
    %52 = vector.load %arg7[%c8_19, %c256_20] : memref<36x512xbf16, #tpu.memory_space<vmem>>, vector<4x256xbf16>
    tpu.vector_store %arg7[%c8_19, %c256_20], %51 {strides = array<i32>} : memref<36x512xbf16, #tpu.memory_space<vmem>>, vector<4x256xbf16>,
    %53 = vector.extract_strided_slice %40 {offsets = [0, 16], sizes = [4, 256], strides = [1, 1]} : vector<4x290xbf16> to vector<4x256xbf16>
    %54 = vector.extract_strided_slice %0 {offsets = [0, 0], sizes = [1, 256], strides = [1, 1]} : vector<3x256xbf16> to vector<1x256xbf16>
    %55 = vector.broadcast %54 : vector<1x256xbf16> to vector<4x256xbf16>
    %56 = arith.mulf %53, %55 : vector<4x256xbf16>
    %c12_21 = arith.constant 12 : index
    %c256_22 = arith.constant 256 : index
    %57 = vector.load %arg7[%c12_21, %c256_22] : memref<36x512xbf16, #tpu.memory_space<vmem>>, vector<4x256xbf16>
    tpu.vector_store %arg7[%c12_21, %c256_22], %56 {strides = array<i32>} : memref<36x512xbf16, #tpu.memory_space<vmem>>, vector<4x256xbf16>,
    %58 = vector.extract_strided_slice %40 {offsets = [0, 17], sizes = [4, 256], strides = [1, 1]} : vector<4x290xbf16> to vector<4x256xbf16>
    %c16_23 = arith.constant 16 : index
    %c256_24 = arith.constant 256 : index
    %59 = vector.load %arg7[%c16_23, %c256_24] : memref<36x512xbf16, #tpu.memory_space<vmem>>, vector<4x256xbf16>
    tpu.vector_store %arg7[%c16_23, %c256_24], %58 {strides = array<i32>} : memref<36x512xbf16, #tpu.memory_space<vmem>>, vector<4x256xbf16>,
    %60 = vector.extract_strided_slice %40 {offsets = [0, 18], sizes = [4, 256], strides = [1, 1]} : vector<4x290xbf16> to vector<4x256xbf16>
    %61 = vector.extract_strided_slice %0 {offsets = [2, 0], sizes = [1, 256], strides = [1, 1]} : vector<3x256xbf16> to vector<1x256xbf16>
    %62 = vector.broadcast %61 : vector<1x256xbf16> to vector<4x256xbf16>
    %63 = arith.mulf %60, %62 : vector<4x256xbf16>
    %c20_25 = arith.constant 20 : index
    %c256_26 = arith.constant 256 : index
    %64 = vector.load %arg7[%c20_25, %c256_26] : memref<36x512xbf16, #tpu.memory_space<vmem>>, vector<4x256xbf16>
    tpu.vector_store %arg7[%c20_25, %c256_26], %63 {strides = array<i32>} : memref<36x512xbf16, #tpu.memory_space<vmem>>, vector<4x256xbf16>,
    %65 = vector.extract_strided_slice %40 {offsets = [0, 32], sizes = [4, 256], strides = [1, 1]} : vector<4x290xbf16> to vector<4x256xbf16>
    %66 = vector.extract_strided_slice %0 {offsets = [0, 0], sizes = [1, 256], strides = [1, 1]} : vector<3x256xbf16> to vector<1x256xbf16>
    %67 = vector.broadcast %66 : vector<1x256xbf16> to vector<4x256xbf16>
    %68 = arith.mulf %65, %67 : vector<4x256xbf16>
    %c24_27 = arith.constant 24 : index
    %c256_28 = arith.constant 256 : index
    %69 = vector.load %arg7[%c24_27, %c256_28] : memref<36x512xbf16, #tpu.memory_space<vmem>>, vector<4x256xbf16>
    tpu.vector_store %arg7[%c24_27, %c256_28], %68 {strides = array<i32>} : memref<36x512xbf16, #tpu.memory_space<vmem>>, vector<4x256xbf16>,
    %70 = vector.extract_strided_slice %40 {offsets = [0, 33], sizes = [4, 256], strides = [1, 1]} : vector<4x290xbf16> to vector<4x256xbf16>
    %c28_29 = arith.constant 28 : index
    %c256_30 = arith.constant 256 : index
    %71 = vector.load %arg7[%c28_29, %c256_30] : memref<36x512xbf16, #tpu.memory_space<vmem>>, vector<4x256xbf16>
    tpu.vector_store %arg7[%c28_29, %c256_30], %70 {strides = array<i32>} : memref<36x512xbf16, #tpu.memory_space<vmem>>, vector<4x256xbf16>,
    %72 = vector.extract_strided_slice %40 {offsets = [0, 34], sizes = [4, 256], strides = [1, 1]} : vector<4x290xbf16> to vector<4x256xbf16>
    %73 = vector.extract_strided_slice %0 {offsets = [2, 0], sizes = [1, 256], strides = [1, 1]} : vector<3x256xbf16> to vector<1x256xbf16>
    %74 = vector.broadcast %73 : vector<1x256xbf16> to vector<4x256xbf16>
    %75 = arith.mulf %72, %74 : vector<4x256xbf16>
    %c32_31 = arith.constant 32 : index
    %c256_32 = arith.constant 256 : index
    %76 = vector.load %arg7[%c32_31, %c256_32] : memref<36x512xbf16, #tpu.memory_space<vmem>>, vector<4x256xbf16>
    tpu.vector_store %arg7[%c32_31, %c256_32], %75 {strides = array<i32>} : memref<36x512xbf16, #tpu.memory_space<vmem>>, vector<4x256xbf16>,
    %c0_33 = arith.constant 0 : index
    %c0_34 = arith.constant 0 : index
    %77 = vector.load %arg2[%c0_33, %c0_34] : memref<8x36xbf16, #tpu.memory_space<vmem>>, vector<8x36xbf16>
    %c0_35 = arith.constant 0 : index
    %c0_36 = arith.constant 0 : index
    %78 = vector.load %arg7[%c0_35, %c0_36] : memref<36x512xbf16, #tpu.memory_space<vmem>>, vector<36x512xbf16>
    %cst = arith.constant dense<0.000000e+00> : vector<8x512xf32>
    %79 = tpu.matmul %77, %78, %cst {dimension_numbers = #tpu.dot_dimension_numbers<[1], [0], [0], [1], [0, 0, 1, 1], [], []>} : vector<8x36xbf16>, vector<36x512xbf16>, vector<8x512xf32> -> vector<8x512xf32>
    %80 = vector.extract_strided_slice %79 {offsets = [0, 0], sizes = [8, 256], strides = [1, 1]} : vector<8x512xf32> to vector<8x256xf32>
    %c0_37 = arith.constant 0 : index
    %c0_38 = arith.constant 0 : index
    %c0_39 = arith.constant 0 : index
    %81 = vector.load %arg4[%c0_37, %c0_38, %c0_39] : memref<2x8x256xf32, #tpu.memory_space<vmem>>, vector<1x8x256xf32>
    %82 = vector.shape_cast %81 : vector<1x8x256xf32> to vector<8x256xf32>
    %83 = vector.shape_cast %80 : vector<8x256xf32> to vector<1x8x256xf32>
    tpu.vector_store %arg4[%c0_37, %c0_38, %c0_39], %83 {strides = array<i32>} : memref<2x8x256xf32, #tpu.memory_space<vmem>>, vector<1x8x256xf32>,
    %84 = vector.extract_strided_slice %79 {offsets = [0, 256], sizes = [8, 256], strides = [1, 1]} : vector<8x512xf32> to vector<8x256xf32>
    %c1_40 = arith.constant 1 : index
    %c0_41 = arith.constant 0 : index
    %c0_42 = arith.constant 0 : index
    %85 = vector.load %arg4[%c1_40, %c0_41, %c0_42] : memref<2x8x256xf32, #tpu.memory_space<vmem>>, vector<1x8x256xf32>
    %86 = vector.shape_cast %85 : vector<1x8x256xf32> to vector<8x256xf32>
    %87 = vector.shape_cast %84 : vector<8x256xf32> to vector<1x8x256xf32>
    tpu.vector_store %arg4[%c1_40, %c0_41, %c0_42], %87 {strides = array<i32>} : memref<2x8x256xf32, #tpu.memory_space<vmem>>, vector<1x8x256xf32>,
    %cst_43 = arith.constant dense<0.000000e+00> : vector<8xf32>
    %88 = vector.multi_reduction <add>, %79, %cst_43 [1] : vector<8x512xf32> to vector<8xf32>
    %89 = vector.shape_cast %88 : vector<8xf32> to vector<8x1xf32>
    %c0_44 = arith.constant 0 : index
    %c0_45 = arith.constant 0 : index
    %c0_46 = arith.constant 0 : index
    %90 = vector.load %arg5[%c0_44, %c0_45, %c0_46] : memref<1x8x1xf32, #tpu.memory_space<vmem>>, vector<1x8x1xf32>
    %91 = vector.shape_cast %90 : vector<1x8x1xf32> to vector<8x1xf32>
    %92 = vector.shape_cast %89 : vector<8x1xf32> to vector<1x8x1xf32>
    tpu.vector_store %arg5[%c0_44, %c0_45, %c0_46], %92 {strides = array<i32>} : memref<1x8x1xf32, #tpu.memory_space<vmem>>, vector<1x8x1xf32>,
    %93 = arith.mulf %79, %79 : vector<8x512xf32>
    %cst_47 = arith.constant dense<0.000000e+00> : vector<8xf32>
    %94 = vector.multi_reduction <add>, %93, %cst_47 [1] : vector<8x512xf32> to vector<8xf32>
    %95 = vector.shape_cast %94 : vector<8xf32> to vector<8x1xf32>
    %c0_48 = arith.constant 0 : index
    %c0_49 = arith.constant 0 : index
    %c0_50 = arith.constant 0 : index
    %96 = vector.load %arg6[%c0_48, %c0_49, %c0_50] : memref<1x8x1xf32, #tpu.memory_space<vmem>>, vector<1x8x1xf32>
    %97 = vector.shape_cast %96 : vector<1x8x1xf32> to vector<8x1xf32>
    %98 = vector.shape_cast %95 : vector<8x1xf32> to vector<1x8x1xf32>
    tpu.vector_store %arg6[%c0_48, %c0_49, %c0_50], %98 {strides = array<i32>} : memref<1x8x1xf32, #tpu.memory_space<vmem>>, vector<1x8x1xf32>,
    return
  }
  func.func @transform_0(%arg0: i32) -> (i32, i32, i32) {
    %c0_i32 = arith.constant 0 : i32
    %c0_i32_0 = arith.constant 0 : i32
    %c0_i32_1 = arith.constant 0 : i32
    return %arg0, %c0_i32, %c0_i32_0 : i32, i32, i32
  }
  func.func @transform_1(%arg0: i32) -> (i32, i32) {
    %c0_i32 = arith.constant 0 : i32
    %c0_i32_0 = arith.constant 0 : i32
    %c0_i32_1 = arith.constant 0 : i32
    return %c0_i32, %c0_i32_0 : i32, i32
  }
  func.func @transform_2(%arg0: i32) -> (i32, i32) {
    %c0_i32 = arith.constant 0 : i32
    %c0_i32_0 = arith.constant 0 : i32
    %c0_i32_1 = arith.constant 0 : i32
    return %c0_i32, %c0_i32_0 : i32, i32
  }
  func.func @transform_3(%arg0: i32) -> (i32, i32, i32) {
    %c0_i32 = arith.constant 0 : i32
    %c0_i32_0 = arith.constant 0 : i32
    %c0_i32_1 = arith.constant 0 : i32
    return %arg0, %c0_i32, %c0_i32_0 : i32, i32, i32
  }
  func.func @transform_4(%arg0: i32) -> (i32, i32, i32) {
    %c0_i32 = arith.constant 0 : i32
    %c0_i32_0 = arith.constant 0 : i32
    %c0_i32_1 = arith.constant 0 : i32
    return %arg0, %c0_i32, %c0_i32_0 : i32, i32, i32
  }
  func.func @transform_5(%arg0: i32) -> (i32, i32, i32) {
    %c0_i32 = arith.constant 0 : i32
    %c0_i32_0 = arith.constant 0 : i32
    %c0_i32_1 = arith.constant 0 : i32
    return %arg0, %c0_i32, %c0_i32_0 : i32, i32, i32
  }
}

module attributes {stable_mosaic.version = 11 : i64} {
  func.func @_conv3x3_stats_kernel(%arg0: i32, %arg1: memref<2x8x290xbf16, #tpu.memory_space<vmem>>, %arg2: memref<4x72xbf16, #tpu.memory_space<vmem>>, %arg3: memref<3x256xbf16, #tpu.memory_space<vmem>>, %arg4: memref<2x4x256xf32, #tpu.memory_space<vmem>>, %arg5: memref<1x4x1xf32, #tpu.memory_space<vmem>>, %arg6: memref<1x4x1xf32, #tpu.memory_space<vmem>>, %arg7: memref<72x512xbf16, #tpu.memory_space<vmem>>) attributes {dimension_semantics = [#tpu.dimension_semantics<parallel>], iteration_bounds = array<i64: 1>, scalar_prefetch = 0 : i64, scratch_operands = 1 : i64, tpu.core_type = #tpu.core_type<tc>, window_params = [{transform_indices = @transform_0, window_bounds = array<i64: 2, 8, 290>}, {pipeline_mode = #tpu.pipeline_mode<synchronous>, transform_indices = @transform_1, window_bounds = array<i64: 4, 72>}, {pipeline_mode = #tpu.pipeline_mode<synchronous>, transform_indices = @transform_2, window_bounds = array<i64: 3, 256>}, {transform_indices = @transform_3, window_bounds = array<i64: 2, 4, 256>}, {transform_indices = @transform_4, window_bounds = array<i64: 1, 4, 1>}, {transform_indices = @transform_5, window_bounds = array<i64: 1, 4, 1>}]} {
    %c0 = arith.constant 0 : index
    %c0_0 = arith.constant 0 : index
    %0 = vector.load %arg3[%c0, %c0_0] : memref<3x256xbf16, #tpu.memory_space<vmem>>, vector<3x256xbf16>
    %c0_1 = arith.constant 0 : index
    %c0_2 = arith.constant 0 : index
    %c0_3 = arith.constant 0 : index
    %1 = vector.load %arg1[%c0_1, %c0_2, %c0_3] : memref<2x8x290xbf16, #tpu.memory_space<vmem>>, vector<1x8x290xbf16>
    %2 = vector.shape_cast %1 : vector<1x8x290xbf16> to vector<8x290xbf16>
    %3 = vector.extract_strided_slice %2 {offsets = [0, 0], sizes = [8, 256], strides = [1, 1]} : vector<8x290xbf16> to vector<8x256xbf16>
    %4 = vector.extract_strided_slice %0 {offsets = [0, 0], sizes = [1, 256], strides = [1, 1]} : vector<3x256xbf16> to vector<1x256xbf16>
    %5 = vector.broadcast %4 : vector<1x256xbf16> to vector<8x256xbf16>
    %6 = arith.mulf %3, %5 : vector<8x256xbf16>
    %c0_4 = arith.constant 0 : index
    %c0_5 = arith.constant 0 : index
    %7 = vector.load %arg7[%c0_4, %c0_5] : memref<72x512xbf16, #tpu.memory_space<vmem>>, vector<8x256xbf16>
    tpu.vector_store %arg7[%c0_4, %c0_5], %6 {strides = array<i32>} : memref<72x512xbf16, #tpu.memory_space<vmem>>, vector<8x256xbf16>,
    %8 = vector.extract_strided_slice %2 {offsets = [0, 1], sizes = [8, 256], strides = [1, 1]} : vector<8x290xbf16> to vector<8x256xbf16>
    %c8 = arith.constant 8 : index
    %c0_6 = arith.constant 0 : index
    %9 = vector.load %arg7[%c8, %c0_6] : memref<72x512xbf16, #tpu.memory_space<vmem>>, vector<8x256xbf16>
    tpu.vector_store %arg7[%c8, %c0_6], %8 {strides = array<i32>} : memref<72x512xbf16, #tpu.memory_space<vmem>>, vector<8x256xbf16>,
    %10 = vector.extract_strided_slice %2 {offsets = [0, 2], sizes = [8, 256], strides = [1, 1]} : vector<8x290xbf16> to vector<8x256xbf16>
    %11 = vector.extract_strided_slice %0 {offsets = [2, 0], sizes = [1, 256], strides = [1, 1]} : vector<3x256xbf16> to vector<1x256xbf16>
    %12 = vector.broadcast %11 : vector<1x256xbf16> to vector<8x256xbf16>
    %13 = arith.mulf %10, %12 : vector<8x256xbf16>
    %c16 = arith.constant 16 : index
    %c0_7 = arith.constant 0 : index
    %14 = vector.load %arg7[%c16, %c0_7] : memref<72x512xbf16, #tpu.memory_space<vmem>>, vector<8x256xbf16>
    tpu.vector_store %arg7[%c16, %c0_7], %13 {strides = array<i32>} : memref<72x512xbf16, #tpu.memory_space<vmem>>, vector<8x256xbf16>,
    %15 = vector.extract_strided_slice %2 {offsets = [0, 16], sizes = [8, 256], strides = [1, 1]} : vector<8x290xbf16> to vector<8x256xbf16>
    %16 = vector.extract_strided_slice %0 {offsets = [0, 0], sizes = [1, 256], strides = [1, 1]} : vector<3x256xbf16> to vector<1x256xbf16>
    %17 = vector.broadcast %16 : vector<1x256xbf16> to vector<8x256xbf16>
    %18 = arith.mulf %15, %17 : vector<8x256xbf16>
    %c24 = arith.constant 24 : index
    %c0_8 = arith.constant 0 : index
    %19 = vector.load %arg7[%c24, %c0_8] : memref<72x512xbf16, #tpu.memory_space<vmem>>, vector<8x256xbf16>
    tpu.vector_store %arg7[%c24, %c0_8], %18 {strides = array<i32>} : memref<72x512xbf16, #tpu.memory_space<vmem>>, vector<8x256xbf16>,
    %20 = vector.extract_strided_slice %2 {offsets = [0, 17], sizes = [8, 256], strides = [1, 1]} : vector<8x290xbf16> to vector<8x256xbf16>
    %c32 = arith.constant 32 : index
    %c0_9 = arith.constant 0 : index
    %21 = vector.load %arg7[%c32, %c0_9] : memref<72x512xbf16, #tpu.memory_space<vmem>>, vector<8x256xbf16>
    tpu.vector_store %arg7[%c32, %c0_9], %20 {strides = array<i32>} : memref<72x512xbf16, #tpu.memory_space<vmem>>, vector<8x256xbf16>,
    %22 = vector.extract_strided_slice %2 {offsets = [0, 18], sizes = [8, 256], strides = [1, 1]} : vector<8x290xbf16> to vector<8x256xbf16>
    %23 = vector.extract_strided_slice %0 {offsets = [2, 0], sizes = [1, 256], strides = [1, 1]} : vector<3x256xbf16> to vector<1x256xbf16>
    %24 = vector.broadcast %23 : vector<1x256xbf16> to vector<8x256xbf16>
    %25 = arith.mulf %22, %24 : vector<8x256xbf16>
    %c40 = arith.constant 40 : index
    %c0_10 = arith.constant 0 : index
    %26 = vector.load %arg7[%c40, %c0_10] : memref<72x512xbf16, #tpu.memory_space<vmem>>, vector<8x256xbf16>
    tpu.vector_store %arg7[%c40, %c0_10], %25 {strides = array<i32>} : memref<72x512xbf16, #tpu.memory_space<vmem>>, vector<8x256xbf16>,
    %27 = vector.extract_strided_slice %2 {offsets = [0, 32], sizes = [8, 256], strides = [1, 1]} : vector<8x290xbf16> to vector<8x256xbf16>
    %28 = vector.extract_strided_slice %0 {offsets = [0, 0], sizes = [1, 256], strides = [1, 1]} : vector<3x256xbf16> to vector<1x256xbf16>
    %29 = vector.broadcast %28 : vector<1x256xbf16> to vector<8x256xbf16>
    %30 = arith.mulf %27, %29 : vector<8x256xbf16>
    %c48 = arith.constant 48 : index
    %c0_11 = arith.constant 0 : index
    %31 = vector.load %arg7[%c48, %c0_11] : memref<72x512xbf16, #tpu.memory_space<vmem>>, vector<8x256xbf16>
    tpu.vector_store %arg7[%c48, %c0_11], %30 {strides = array<i32>} : memref<72x512xbf16, #tpu.memory_space<vmem>>, vector<8x256xbf16>,
    %32 = vector.extract_strided_slice %2 {offsets = [0, 33], sizes = [8, 256], strides = [1, 1]} : vector<8x290xbf16> to vector<8x256xbf16>
    %c56 = arith.constant 56 : index
    %c0_12 = arith.constant 0 : index
    %33 = vector.load %arg7[%c56, %c0_12] : memref<72x512xbf16, #tpu.memory_space<vmem>>, vector<8x256xbf16>
    tpu.vector_store %arg7[%c56, %c0_12], %32 {strides = array<i32>} : memref<72x512xbf16, #tpu.memory_space<vmem>>, vector<8x256xbf16>,
    %34 = vector.extract_strided_slice %2 {offsets = [0, 34], sizes = [8, 256], strides = [1, 1]} : vector<8x290xbf16> to vector<8x256xbf16>
    %35 = vector.extract_strided_slice %0 {offsets = [2, 0], sizes = [1, 256], strides = [1, 1]} : vector<3x256xbf16> to vector<1x256xbf16>
    %36 = vector.broadcast %35 : vector<1x256xbf16> to vector<8x256xbf16>
    %37 = arith.mulf %34, %36 : vector<8x256xbf16>
    %c64 = arith.constant 64 : index
    %c0_13 = arith.constant 0 : index
    %38 = vector.load %arg7[%c64, %c0_13] : memref<72x512xbf16, #tpu.memory_space<vmem>>, vector<8x256xbf16>
    tpu.vector_store %arg7[%c64, %c0_13], %37 {strides = array<i32>} : memref<72x512xbf16, #tpu.memory_space<vmem>>, vector<8x256xbf16>,
    %c1 = arith.constant 1 : index
    %c0_14 = arith.constant 0 : index
    %c0_15 = arith.constant 0 : index
    %39 = vector.load %arg1[%c1, %c0_14, %c0_15] : memref<2x8x290xbf16, #tpu.memory_space<vmem>>, vector<1x8x290xbf16>
    %40 = vector.shape_cast %39 : vector<1x8x290xbf16> to vector<8x290xbf16>
    %41 = vector.extract_strided_slice %40 {offsets = [0, 0], sizes = [8, 256], strides = [1, 1]} : vector<8x290xbf16> to vector<8x256xbf16>
    %42 = vector.extract_strided_slice %0 {offsets = [0, 0], sizes = [1, 256], strides = [1, 1]} : vector<3x256xbf16> to vector<1x256xbf16>
    %43 = vector.broadcast %42 : vector<1x256xbf16> to vector<8x256xbf16>
    %44 = arith.mulf %41, %43 : vector<8x256xbf16>
    %c0_16 = arith.constant 0 : index
    %c256 = arith.constant 256 : index
    %45 = vector.load %arg7[%c0_16, %c256] : memref<72x512xbf16, #tpu.memory_space<vmem>>, vector<8x256xbf16>
    tpu.vector_store %arg7[%c0_16, %c256], %44 {strides = array<i32>} : memref<72x512xbf16, #tpu.memory_space<vmem>>, vector<8x256xbf16>,
    %46 = vector.extract_strided_slice %40 {offsets = [0, 1], sizes = [8, 256], strides = [1, 1]} : vector<8x290xbf16> to vector<8x256xbf16>
    %c8_17 = arith.constant 8 : index
    %c256_18 = arith.constant 256 : index
    %47 = vector.load %arg7[%c8_17, %c256_18] : memref<72x512xbf16, #tpu.memory_space<vmem>>, vector<8x256xbf16>
    tpu.vector_store %arg7[%c8_17, %c256_18], %46 {strides = array<i32>} : memref<72x512xbf16, #tpu.memory_space<vmem>>, vector<8x256xbf16>,
    %48 = vector.extract_strided_slice %40 {offsets = [0, 2], sizes = [8, 256], strides = [1, 1]} : vector<8x290xbf16> to vector<8x256xbf16>
    %49 = vector.extract_strided_slice %0 {offsets = [2, 0], sizes = [1, 256], strides = [1, 1]} : vector<3x256xbf16> to vector<1x256xbf16>
    %50 = vector.broadcast %49 : vector<1x256xbf16> to vector<8x256xbf16>
    %51 = arith.mulf %48, %50 : vector<8x256xbf16>
    %c16_19 = arith.constant 16 : index
    %c256_20 = arith.constant 256 : index
    %52 = vector.load %arg7[%c16_19, %c256_20] : memref<72x512xbf16, #tpu.memory_space<vmem>>, vector<8x256xbf16>
    tpu.vector_store %arg7[%c16_19, %c256_20], %51 {strides = array<i32>} : memref<72x512xbf16, #tpu.memory_space<vmem>>, vector<8x256xbf16>,
    %53 = vector.extract_strided_slice %40 {offsets = [0, 16], sizes = [8, 256], strides = [1, 1]} : vector<8x290xbf16> to vector<8x256xbf16>
    %54 = vector.extract_strided_slice %0 {offsets = [0, 0], sizes = [1, 256], strides = [1, 1]} : vector<3x256xbf16> to vector<1x256xbf16>
    %55 = vector.broadcast %54 : vector<1x256xbf16> to vector<8x256xbf16>
    %56 = arith.mulf %53, %55 : vector<8x256xbf16>
    %c24_21 = arith.constant 24 : index
    %c256_22 = arith.constant 256 : index
    %57 = vector.load %arg7[%c24_21, %c256_22] : memref<72x512xbf16, #tpu.memory_space<vmem>>, vector<8x256xbf16>
    tpu.vector_store %arg7[%c24_21, %c256_22], %56 {strides = array<i32>} : memref<72x512xbf16, #tpu.memory_space<vmem>>, vector<8x256xbf16>,
    %58 = vector.extract_strided_slice %40 {offsets = [0, 17], sizes = [8, 256], strides = [1, 1]} : vector<8x290xbf16> to vector<8x256xbf16>
    %c32_23 = arith.constant 32 : index
    %c256_24 = arith.constant 256 : index
    %59 = vector.load %arg7[%c32_23, %c256_24] : memref<72x512xbf16, #tpu.memory_space<vmem>>, vector<8x256xbf16>
    tpu.vector_store %arg7[%c32_23, %c256_24], %58 {strides = array<i32>} : memref<72x512xbf16, #tpu.memory_space<vmem>>, vector<8x256xbf16>,
    %60 = vector.extract_strided_slice %40 {offsets = [0, 18], sizes = [8, 256], strides = [1, 1]} : vector<8x290xbf16> to vector<8x256xbf16>
    %61 = vector.extract_strided_slice %0 {offsets = [2, 0], sizes = [1, 256], strides = [1, 1]} : vector<3x256xbf16> to vector<1x256xbf16>
    %62 = vector.broadcast %61 : vector<1x256xbf16> to vector<8x256xbf16>
    %63 = arith.mulf %60, %62 : vector<8x256xbf16>
    %c40_25 = arith.constant 40 : index
    %c256_26 = arith.constant 256 : index
    %64 = vector.load %arg7[%c40_25, %c256_26] : memref<72x512xbf16, #tpu.memory_space<vmem>>, vector<8x256xbf16>
    tpu.vector_store %arg7[%c40_25, %c256_26], %63 {strides = array<i32>} : memref<72x512xbf16, #tpu.memory_space<vmem>>, vector<8x256xbf16>,
    %65 = vector.extract_strided_slice %40 {offsets = [0, 32], sizes = [8, 256], strides = [1, 1]} : vector<8x290xbf16> to vector<8x256xbf16>
    %66 = vector.extract_strided_slice %0 {offsets = [0, 0], sizes = [1, 256], strides = [1, 1]} : vector<3x256xbf16> to vector<1x256xbf16>
    %67 = vector.broadcast %66 : vector<1x256xbf16> to vector<8x256xbf16>
    %68 = arith.mulf %65, %67 : vector<8x256xbf16>
    %c48_27 = arith.constant 48 : index
    %c256_28 = arith.constant 256 : index
    %69 = vector.load %arg7[%c48_27, %c256_28] : memref<72x512xbf16, #tpu.memory_space<vmem>>, vector<8x256xbf16>
    tpu.vector_store %arg7[%c48_27, %c256_28], %68 {strides = array<i32>} : memref<72x512xbf16, #tpu.memory_space<vmem>>, vector<8x256xbf16>,
    %70 = vector.extract_strided_slice %40 {offsets = [0, 33], sizes = [8, 256], strides = [1, 1]} : vector<8x290xbf16> to vector<8x256xbf16>
    %c56_29 = arith.constant 56 : index
    %c256_30 = arith.constant 256 : index
    %71 = vector.load %arg7[%c56_29, %c256_30] : memref<72x512xbf16, #tpu.memory_space<vmem>>, vector<8x256xbf16>
    tpu.vector_store %arg7[%c56_29, %c256_30], %70 {strides = array<i32>} : memref<72x512xbf16, #tpu.memory_space<vmem>>, vector<8x256xbf16>,
    %72 = vector.extract_strided_slice %40 {offsets = [0, 34], sizes = [8, 256], strides = [1, 1]} : vector<8x290xbf16> to vector<8x256xbf16>
    %73 = vector.extract_strided_slice %0 {offsets = [2, 0], sizes = [1, 256], strides = [1, 1]} : vector<3x256xbf16> to vector<1x256xbf16>
    %74 = vector.broadcast %73 : vector<1x256xbf16> to vector<8x256xbf16>
    %75 = arith.mulf %72, %74 : vector<8x256xbf16>
    %c64_31 = arith.constant 64 : index
    %c256_32 = arith.constant 256 : index
    %76 = vector.load %arg7[%c64_31, %c256_32] : memref<72x512xbf16, #tpu.memory_space<vmem>>, vector<8x256xbf16>
    tpu.vector_store %arg7[%c64_31, %c256_32], %75 {strides = array<i32>} : memref<72x512xbf16, #tpu.memory_space<vmem>>, vector<8x256xbf16>,
    %c0_33 = arith.constant 0 : index
    %c0_34 = arith.constant 0 : index
    %77 = vector.load %arg2[%c0_33, %c0_34] : memref<4x72xbf16, #tpu.memory_space<vmem>>, vector<4x72xbf16>
    %c0_35 = arith.constant 0 : index
    %c0_36 = arith.constant 0 : index
    %78 = vector.load %arg7[%c0_35, %c0_36] : memref<72x512xbf16, #tpu.memory_space<vmem>>, vector<72x512xbf16>
    %cst = arith.constant dense<0.000000e+00> : vector<4x512xf32>
    %79 = tpu.matmul %77, %78, %cst {dimension_numbers = #tpu.dot_dimension_numbers<[1], [0], [0], [1], [0, 0, 1, 1], [], []>} : vector<4x72xbf16>, vector<72x512xbf16>, vector<4x512xf32> -> vector<4x512xf32>
    %80 = vector.extract_strided_slice %79 {offsets = [0, 0], sizes = [4, 256], strides = [1, 1]} : vector<4x512xf32> to vector<4x256xf32>
    %c0_37 = arith.constant 0 : index
    %c0_38 = arith.constant 0 : index
    %c0_39 = arith.constant 0 : index
    %81 = vector.load %arg4[%c0_37, %c0_38, %c0_39] : memref<2x4x256xf32, #tpu.memory_space<vmem>>, vector<1x4x256xf32>
    %82 = vector.shape_cast %81 : vector<1x4x256xf32> to vector<4x256xf32>
    %83 = vector.shape_cast %80 : vector<4x256xf32> to vector<1x4x256xf32>
    tpu.vector_store %arg4[%c0_37, %c0_38, %c0_39], %83 {strides = array<i32>} : memref<2x4x256xf32, #tpu.memory_space<vmem>>, vector<1x4x256xf32>,
    %84 = vector.extract_strided_slice %79 {offsets = [0, 256], sizes = [4, 256], strides = [1, 1]} : vector<4x512xf32> to vector<4x256xf32>
    %c1_40 = arith.constant 1 : index
    %c0_41 = arith.constant 0 : index
    %c0_42 = arith.constant 0 : index
    %85 = vector.load %arg4[%c1_40, %c0_41, %c0_42] : memref<2x4x256xf32, #tpu.memory_space<vmem>>, vector<1x4x256xf32>
    %86 = vector.shape_cast %85 : vector<1x4x256xf32> to vector<4x256xf32>
    %87 = vector.shape_cast %84 : vector<4x256xf32> to vector<1x4x256xf32>
    tpu.vector_store %arg4[%c1_40, %c0_41, %c0_42], %87 {strides = array<i32>} : memref<2x4x256xf32, #tpu.memory_space<vmem>>, vector<1x4x256xf32>,
    %cst_43 = arith.constant dense<0.000000e+00> : vector<4xf32>
    %88 = vector.multi_reduction <add>, %79, %cst_43 [1] : vector<4x512xf32> to vector<4xf32>
    %89 = vector.shape_cast %88 : vector<4xf32> to vector<4x1xf32>
    %c0_44 = arith.constant 0 : index
    %c0_45 = arith.constant 0 : index
    %c0_46 = arith.constant 0 : index
    %90 = vector.load %arg5[%c0_44, %c0_45, %c0_46] : memref<1x4x1xf32, #tpu.memory_space<vmem>>, vector<1x4x1xf32>
    %91 = vector.shape_cast %90 : vector<1x4x1xf32> to vector<4x1xf32>
    %92 = vector.shape_cast %89 : vector<4x1xf32> to vector<1x4x1xf32>
    tpu.vector_store %arg5[%c0_44, %c0_45, %c0_46], %92 {strides = array<i32>} : memref<1x4x1xf32, #tpu.memory_space<vmem>>, vector<1x4x1xf32>,
    %93 = arith.mulf %79, %79 : vector<4x512xf32>
    %cst_47 = arith.constant dense<0.000000e+00> : vector<4xf32>
    %94 = vector.multi_reduction <add>, %93, %cst_47 [1] : vector<4x512xf32> to vector<4xf32>
    %95 = vector.shape_cast %94 : vector<4xf32> to vector<4x1xf32>
    %c0_48 = arith.constant 0 : index
    %c0_49 = arith.constant 0 : index
    %c0_50 = arith.constant 0 : index
    %96 = vector.load %arg6[%c0_48, %c0_49, %c0_50] : memref<1x4x1xf32, #tpu.memory_space<vmem>>, vector<1x4x1xf32>
    %97 = vector.shape_cast %96 : vector<1x4x1xf32> to vector<4x1xf32>
    %98 = vector.shape_cast %95 : vector<4x1xf32> to vector<1x4x1xf32>
    tpu.vector_store %arg6[%c0_48, %c0_49, %c0_50], %98 {strides = array<i32>} : memref<1x4x1xf32, #tpu.memory_space<vmem>>, vector<1x4x1xf32>,
    return
  }
  func.func @transform_0(%arg0: i32) -> (i32, i32, i32) {
    %c0_i32 = arith.constant 0 : i32
    %c0_i32_0 = arith.constant 0 : i32
    %c0_i32_1 = arith.constant 0 : i32
    return %arg0, %c0_i32, %c0_i32_0 : i32, i32, i32
  }
  func.func @transform_1(%arg0: i32) -> (i32, i32) {
    %c0_i32 = arith.constant 0 : i32
    %c0_i32_0 = arith.constant 0 : i32
    %c0_i32_1 = arith.constant 0 : i32
    return %c0_i32, %c0_i32_0 : i32, i32
  }
  func.func @transform_2(%arg0: i32) -> (i32, i32) {
    %c0_i32 = arith.constant 0 : i32
    %c0_i32_0 = arith.constant 0 : i32
    %c0_i32_1 = arith.constant 0 : i32
    return %c0_i32, %c0_i32_0 : i32, i32
  }
  func.func @transform_3(%arg0: i32) -> (i32, i32, i32) {
    %c0_i32 = arith.constant 0 : i32
    %c0_i32_0 = arith.constant 0 : i32
    %c0_i32_1 = arith.constant 0 : i32
    return %arg0, %c0_i32, %c0_i32_0 : i32, i32, i32
  }
  func.func @transform_4(%arg0: i32) -> (i32, i32, i32) {
    %c0_i32 = arith.constant 0 : i32
    %c0_i32_0 = arith.constant 0 : i32
    %c0_i32_1 = arith.constant 0 : i32
    return %arg0, %c0_i32, %c0_i32_0 : i32, i32, i32
  }
  func.func @transform_5(%arg0: i32) -> (i32, i32, i32) {
    %c0_i32 = arith.constant 0 : i32
    %c0_i32_0 = arith.constant 0 : i32
    %c0_i32_1 = arith.constant 0 : i32
    return %arg0, %c0_i32, %c0_i32_0 : i32, i32, i32
  }
}

module attributes {stable_mosaic.version = 11 : i64} {
  func.func @_bn_relu_kernel(%arg0: i32, %arg1: i32, %arg2: memref<1x4x256xf32, #tpu.memory_space<vmem>>, %arg3: memref<4x1xf32, #tpu.memory_space<vmem>>, %arg4: memref<4x1xf32, #tpu.memory_space<vmem>>, %arg5: memref<1x4x256xf32, #tpu.memory_space<vmem>>) attributes {dimension_semantics = [#tpu.dimension_semantics<parallel>, #tpu.dimension_semantics<parallel>], iteration_bounds = array<i64: 2, 1>, scalar_prefetch = 0 : i64, scratch_operands = 0 : i64, tpu.core_type = #tpu.core_type<tc>, window_params = [{transform_indices = @transform_0, window_bounds = array<i64: 1, 4, 256>}, {pipeline_mode = #tpu.pipeline_mode<synchronous>, transform_indices = @transform_1, window_bounds = array<i64: 4, 1>}, {pipeline_mode = #tpu.pipeline_mode<synchronous>, transform_indices = @transform_2, window_bounds = array<i64: 4, 1>}, {transform_indices = @transform_3, window_bounds = array<i64: 1, 4, 256>}]} {
    %c0 = arith.constant 0 : index
    %c0_0 = arith.constant 0 : index
    %c0_1 = arith.constant 0 : index
    %0 = vector.load %arg2[%c0, %c0_0, %c0_1] : memref<1x4x256xf32, #tpu.memory_space<vmem>>, vector<1x4x256xf32>
    %1 = vector.shape_cast %0 : vector<1x4x256xf32> to vector<4x256xf32>
    %c0_2 = arith.constant 0 : index
    %c0_3 = arith.constant 0 : index
    %2 = vector.load %arg3[%c0_2, %c0_3] : memref<4x1xf32, #tpu.memory_space<vmem>>, vector<4x1xf32>
    %3 = vector.broadcast %2 : vector<4x1xf32> to vector<4x256xf32>
    %4 = arith.mulf %1, %3 : vector<4x256xf32>
    %c0_4 = arith.constant 0 : index
    %c0_5 = arith.constant 0 : index
    %5 = vector.load %arg4[%c0_4, %c0_5] : memref<4x1xf32, #tpu.memory_space<vmem>>, vector<4x1xf32>
    %6 = vector.broadcast %5 : vector<4x1xf32> to vector<4x256xf32>
    %7 = arith.addf %4, %6 : vector<4x256xf32>
    %cst = arith.constant 0.000000e+00 : f32
    %8 = vector.broadcast %cst : f32 to vector<4x256xf32>
    %9 = arith.maximumf %7, %8 : vector<4x256xf32>
    %c0_6 = arith.constant 0 : index
    %c0_7 = arith.constant 0 : index
    %c0_8 = arith.constant 0 : index
    %10 = vector.load %arg5[%c0_6, %c0_7, %c0_8] : memref<1x4x256xf32, #tpu.memory_space<vmem>>, vector<1x4x256xf32>
    %11 = vector.shape_cast %10 : vector<1x4x256xf32> to vector<4x256xf32>
    %12 = vector.shape_cast %9 : vector<4x256xf32> to vector<1x4x256xf32>
    tpu.vector_store %arg5[%c0_6, %c0_7, %c0_8], %12 {strides = array<i32>} : memref<1x4x256xf32, #tpu.memory_space<vmem>>, vector<1x4x256xf32>,
    return
  }
  func.func @transform_0(%arg0: i32, %arg1: i32) -> (i32, i32, i32) {
    %c0_i32 = arith.constant 0 : i32
    %c0_i32_0 = arith.constant 0 : i32
    return %arg0, %c0_i32, %arg1 : i32, i32, i32
  }
  func.func @transform_1(%arg0: i32, %arg1: i32) -> (i32, i32) {
    %c0_i32 = arith.constant 0 : i32
    %c0_i32_0 = arith.constant 0 : i32
    %c0_i32_1 = arith.constant 0 : i32
    return %c0_i32, %c0_i32_0 : i32, i32
  }
  func.func @transform_2(%arg0: i32, %arg1: i32) -> (i32, i32) {
    %c0_i32 = arith.constant 0 : i32
    %c0_i32_0 = arith.constant 0 : i32
    %c0_i32_1 = arith.constant 0 : i32
    return %c0_i32, %c0_i32_0 : i32, i32
  }
  func.func @transform_3(%arg0: i32, %arg1: i32) -> (i32, i32, i32) {
    %c0_i32 = arith.constant 0 : i32
    %c0_i32_0 = arith.constant 0 : i32
    return %arg0, %c0_i32, %arg1 : i32, i32, i32
  }
}

</mosaic_0001>

<bundles_post_ra>
// kernel: conv_ode_func_forward.5
= control target key start
LH: loop header
LB: loop body
LE: loop exit
PB: predicated region body
PF: predicated region fallthrough
CT: control target
= control target key end

     0   :  { %s403_s12 = smov 0   ;;  %s405_s13 = smov 0   ;;  %s442_s0 = inlined_call_operand.vmem [shape: f32[2,8,256], index: 0, kind: input, shape index: {}]   ;;  %s443_s1 = inlined_call_operand.vmem [shape: f32[8,1], index: 1, kind: input, shape index: {}]   ;;  %s444_s2 = inlined_call_operand.vmem [shape: f32[8,1], index: 2, kind: input, shape index: {}]   ;;  %s445_s3 = inlined_call_operand.vmem [shape: f32[2,8,256], index: 3, kind: output, shape index: {}]  }
   0x1   :  { %s407_s14 = smov 0  }
   0x2 LB: > { %s25_s15 = sadd.s32 1, %s376_s13  ;;  %p323_p0 = scmp.ge.s32.totalorder %s380_s14, 1  ;;  %s380_s14 = sphi %s407_s14, %s13_s14   ;;  %s376_s13 = sphi %s405_s13, %s447_s13   ;;  %s372_s12 = sphi %s403_s12, %s446_s12  }
   0x3   : > { %p27_p1 = scmp.ge.s32.totalorder %s25_s15, 2  ;;  %p158_p2 = scmp.lt.s32.totalorder %s380_s14, 3 }
   0x5   : > { %s449_s15 = smov (%p27_p1, %s25_s15), 0  ;;  %p159_p3 = pnand %p323_p0, %p158_p2 }
   0x6   : > { %v212_v0 = vld [vmem:[%s443_s1] sm:$0xff] (!%p159_p3)  ;;  %v382_v1 = vmov (!%p159_p3), 0   ;;  %p191_p4 = scmp.lt.s32.totalorder (!%p159_p3), %s372_s12, 1 }
   0x7   : > { %162 = sbr.rel (%p159_p3) target bundleno = 145 (0x91), region = 32  ;;  %357 = vset.pattern.permute.xlu0 (!%p159_p3), %v382_v1  ;;  %v220_v2 = vld [vmem:[%s444_s2] sm:$0xff] (!%p159_p3) }
   0x8   : > { %215 = vperm.xlu0 (!%p159_p3), %357, %v212_v0  }
   0xc   : > { %223 = vperm.xlu0 (!%p159_p3), %357, %v220_v2  }
   0xe   : > { %s451_s12 = smov (!%p191_p4, %s372_s12), 1 }
   0xf   : > { %s330_s20 = sshll.u32 %s451_s12, 4 }
  0x10   : > { %s198_s23 = scalar_lea.vmem %s442_s0, %s330_s20  ;;  %s208_s26 = scalar_lea.vmem %s445_s3, %s330_s20 }
  0x11   : > { %v210_v4 = vld [vmem:[%s198_s23] sm:$0xff]  ;;  %v211_v5 = vld [vmem:[%s198_s23 + $0x8] sm:$0xff] }
  0x87   : > { %v216_v3 = vpop.permute.xlu0 %215 }
  0x88   : > { %v218_v6 = vmul.f32 %v216_v3, %v210_v4  ;;  %v219_v7 = vmul.f32 %v216_v3, %v211_v5 }
  0x8b   : > { %v224_v8 = vpop.permute.xlu0 %223 }
  0x8c   : > { %v226_v9 = vadd.f32 %v224_v8, %v218_v6  ;;  %v227_v10 = vadd.f32 %v224_v8, %v219_v7 }
  0x8e   : > { %v228_v11 = vmax.f32 %v226_v9, 0.0  ;;  %v229_v12 = vmax.f32 %v227_v10, 0.0 }
  0x90   : > { %230 = vst [vmem:[%s208_s26] sm:$0xff] %v228_v11  ;;  %231 = vst [vmem:[%s208_s26 + $0x8] sm:$0xff] %v229_v12 }
  0x91 PF: > { %s13_s14 = sadd.s32 1, %s380_s14   ;;  %s446_s12 = smov %s376_s13 }
  0x92   : > { %p10_p5 = scmp.ge.s32.totalorder %s13_s14, 4   ;;  %s447_s13 = smov %s449_s15 }
  0x94   :  { %12 = sbr.rel (!%p10_p5) target bundleno = 2 (0x2), region = 62 }

// kernel: conv_ode_func_forward.4
= control target key start
LH: loop header
LB: loop body
LE: loop exit
PB: predicated region body
PF: predicated region fallthrough
CT: control target
= control target key end

     0   :  { %v32_v0 = vlaneseq  ;;  %v760_v2 = vmov 1983009808   ;;  %s761_s23 = smov 2   ;;  %s762_s24 = smov 18   ;;  %vm114_vm0 = vcmask 15360   ;;  %vm148_vm1 = vcmask 130048   ;;  %s996_s2 = inlined_call_operand.vmem [shape: bf16[3,256], index: 2, kind: input, shape index: {}]   ;;  %s997_s0 = inlined_call_operand.vmem [shape: bf16[2,4,290], index: 0, kind: input, shape index: {}]   ;;  %s998_s1 = inlined_call_operand.vmem [shape: bf16[8,36], index: 1, kind: input, shape index: {}]   ;;  %s999_s3 = inlined_call_operand.vmem [shape: f32[2,8,256], index: 3, kind: output, shape index: {0}]   ;;  %s1000_s4 = inlined_call_operand.vmem [shape: f32[1,8,1], index: 4, kind: output, shape index: {1}]   ;;  %s1001_s5 = inlined_call_operand.vmem [shape: f32[1,8,1], index: 5, kind: output, shape index: {2}]  }
   0x1   :  { %v707_v1 = vld.sshfl [vmem:[%s996_s2] sm:$0x33 pattern:$0x76325410]  ;;  %v47_v3 = vunpack.c.l.s4 %v760_v2  ;;  %v820_v21 = vld [vmem:[%s997_s0 + $0x6] sm:$0x3f] }
   0x2   :  { %v28_v4 = vcombine.high %v707_v1, %v707_v1  ;;  %v30_v5 = vpack.i.b16 %v707_v1, %v707_v1  ;;  %v33_v6 = vshrl.u32 %v32_v0, 7  ;;  %v813_v18 = vld [vmem:[%s997_s0] sm:$0x3f]  ;;  %s763_s25 = smov 16   ;;  %s764_s26 = smov 32   ;;  %v325_v26 = vcombine.low %v820_v21, %v820_v21 }
   0x3   :  { %v48_v7 = vunpack.c.0.s8 %v47_v3  ;;  %v66_v24 = vcombine.low %v813_v18, %v813_v18  ;;  %s765_s0 = smov 34   ;;  %s766_s27 = smov 127   ;;  %v179_v30 = vcombine.high %v813_v18, %v813_v18  ;;  %v404_v32 = vcombine.high %v820_v21, %v820_v21 }
   0x4   :  { %v37_v8 = vpack.i.b16 %v28_v4, %v28_v4  ;;  %v95_v9 = vsub.s32 1, %v33_v6  ;;  %v34_v10 = vsub.s32 0, %v33_v6  ;;  %s767_s28 = smov 111   ;;  %s768_s29 = smov 95   ;;  %vm235_vm2 = vcmask 261120  }
   0x5   :  { %v808_v11 = vsub.s32 %v48_v7, %v33_v6  ;;  %vm201_vm3 = vcmask 146432   ;;  %s769_s30 = smov 126   ;;  %vm280_vm4 = vcmask 277504   ;;  %s770_s6 = smov 112   ;;  %vm87_vm5 = vcmask 1043456  }
   0x6   :  { %v96_v12 = vrot.slane %v30_v5, %v95_v9  ;;  %v100_v13 = vrot.slane %v37_v8, %v95_v9  ;;  %v35_v14 = vrot.slane %v30_v5, %v34_v10  ;;  %v42_v15 = vrot.slane %v37_v8, %v34_v10  ;;  %s771_s7 = smov 96   ;;  %s772_s8 = smov 110  }
   0x7   :  { %v73_v25 = vrot.slane %v66_v24, %v808_v11  ;;  %v80_v27 = vrot.slane %v813_v18, %v808_v11  ;;  %v332_v28 = vrot.slane %v325_v26, %v808_v11  ;;  %v339_v29 = vrot.slane %v820_v21, %v808_v11  ;;  %s773_s9 = smov 94  }
   0x8   :  { %v103_v16 = vcombine.low %v96_v12, %v100_v13  ;;  %v45_v17 = vcombine.low %v35_v14, %v42_v15  ;;  %v186_v31 = vrot.slane %v179_v30, %v808_v11  ;;  %v411_v33 = vrot.slane %v404_v32, %v808_v11 }
   0x9   :  { %vm89_vm6 = vcmask 1039360   ;;  %vm194_vm7 = vcmask 908288   ;;  %vm273_vm8 = vcmask 777216   ;;  %vm141_vm9 = vcmask 1031168  }
   0xa   :  { %v110_v19 = vrot.slane %v103_v16, %v808_v11  ;;  %v52_v20 = vrot.slane %v45_v17, %v808_v11  ;;  %vm175_vm10 = vcmask 916480   ;;  %vm262_vm11 = vcmask 785408  }
   0xb   :  { %vm228_vm12 = vcmask 900096   ;;  %vm307_vm13 = vcmask 769024   ;;  %vm578_vm14 = vcmask 1041408   ;;  %vm574_vm15 = vcmask 293888  }
   0xc   :  { %111 = vrot.lane.b32.xlu0 %v110_v19, %s761_s23  ;;  %198 = vrot.lane.b32.xlu1 %v110_v19, %s762_s24  ;;  %v54_v22 = vmul.bf16 %v52_v20, %v813_v18  ;;  %v313_v23 = vmul.bf16 %v820_v21, %v52_v20 }
   0xe   :  { %708 = vst.sshfl [vmem:[#allocation2] sm:$0xf pattern:$0x76325410] %v54_v22 }
   0xf   :  { %710 = vst.sshfl [vmem:[#allocation2 + $0x8] sm:$0xf pattern:$0x76325410] %v313_v23 }
  0x10   :  { %145 = vrot.lane.b32.xlu0 %v52_v20, %s763_s25  ;;  %232 = vrot.lane.b32.xlu1 %v52_v20, %s764_s26 }
  0x14   :  { %277 = vrot.lane.b32.xlu0 %v110_v19, %s765_s0  ;;  %81 = vrot.lane.b32.xlu1 %v73_v25, %s766_s27 }
  0x18   :  { %83 = vrot.lane.b32.xlu0 %v80_v27, %s766_s27  ;;  %340 = vrot.lane.b32.xlu1 %v332_v28, %s766_s27 }
  0x1c   :  { %342 = vrot.lane.b32.xlu0 %v339_v29, %s766_s27  ;;  %187 = vrot.lane.b32.xlu1 %v80_v27, %s767_s28 }
  0x20   :  { %189 = vrot.lane.b32.xlu0 %v186_v31, %s767_s28  ;;  %266 = vrot.lane.b32.xlu1 %v73_v25, %s768_s29 }
  0x24   :  { %268 = vrot.lane.b32.xlu0 %v80_v27, %s768_s29  ;;  %412 = vrot.lane.b32.xlu1 %v339_v29, %s767_s28 }
  0x28   :  { %414 = vrot.lane.b32.xlu0 %v411_v33, %s767_s28  ;;  %476 = vrot.lane.b32.xlu1 %v332_v28, %s768_s29 }
  0x2c   :  { %478 = vrot.lane.b32.xlu0 %v339_v29, %s768_s29 }
  0x7e   :  { %v112_v34 = vpop.permute.xlu0 %111  ;;  %v199_v35 = vpop.permute.xlu1 %198 }
  0x7f   :  { %v113_v36 = vrot.slane %v112_v34, 6  ;;  %v200_v47 = vrot.slane %v199_v35, 6 }
  0x81   :  { %v115_v37 = vsel %vm114_vm0, %v113_v36, %v112_v34  ;;  %v202_v56 = vsel %vm201_vm3, %v200_v47, %v199_v35  ;;  %vm683_vm0 = vcmask 7168  }
  0x82   :  { %v841_v38 = vmul.bf16 %v115_v37, %v813_v18  ;;  %v146_v39 = vpop.permute.xlu0 %145  ;;  %v233_v40 = vpop.permute.xlu1 %232  ;;  %v844_v43 = vmul.bf16 %v820_v21, %v115_v37  ;;  %v869_v62 = vmul.bf16 %v202_v56, %v813_v18  ;;  %v884_v8 = vmul.bf16 %v820_v21, %v202_v56 }
  0x83   :  { %v147_v41 = vrot.slane %v146_v39, 6  ;;  %v234_v42 = vrot.slane %v233_v40, 6 }
  0x84   :  { %v126_v46 = vrot.slane %v841_v38, %v808_v11  ;;  %v359_v55 = vrot.slane %v844_v43, %v808_v11  ;;  %v220_v10 = vrot.slane %v869_v62, %v808_v11  ;;  %v119_v20 = vcombine.high %v841_v38, %v841_v38 }
  0x85   :  { %v149_v44 = vsel %vm148_vm1, %v147_v41, %v146_v39  ;;  %v236_v45 = vsel %vm235_vm2, %v234_v42, %v233_v40  ;;  %v438_v23 = vrot.slane %v884_v8, %v808_v11  ;;  %v352_v30 = vcombine.high %v844_v43, %v844_v43 }
  0x86   :  { %v849_v48 = vmul.bf16 %v149_v44, %v813_v18  ;;  %v278_v49 = vpop.permute.xlu0 %277  ;;  %v82_v50 = vpop.permute.xlu1 %81  ;;  %v852_v51 = vmul.bf16 %v236_v45, %v813_v18  ;;  %134 = vrot.lane.b32.xlu1 %v126_v46, %s769_s30  ;;  %v856_v53 = vmul.bf16 %v820_v21, %v149_v44  ;;  %v872_v63 = vmul.bf16 %v820_v21, %v236_v45 }
  0x87   :  { %v279_v52 = vrot.slane %v278_v49, 6  ;;  %v85_v60 = vrot.slane %v82_v50, 4  ;;  %v133_v31 = vrot.slane %v119_v20, %v808_v11  ;;  %v206_v40 = vcombine.low %v869_v62, %v869_v62 }
  0x88   :  { %v167_v54 = vrot.slane %v849_v48, %v808_v11  ;;  %v247_v59 = vrot.slane %v852_v51, %v808_v11  ;;  %v393_v0 = vrot.slane %v856_v53, %v808_v11  ;;  %v458_v12 = vrot.slane %v872_v63, %v808_v11 }
  0x89   :  { %v866_v61 = vsel %vm280_vm4, %v279_v52, %v278_v49  ;;  %v153_v22 = vcombine.low %v849_v48, %v849_v48  ;;  %v379_v32 = vcombine.low %v856_v53, %v856_v53  ;;  %v240_v41 = vcombine.high %v852_v51, %v852_v51 }
  0x8a   :  { %v84_v57 = vpop.permute.xlu0 %83  ;;  %v341_v58 = vpop.permute.xlu1 %340  ;;  %170 = vrot.lane.b32.xlu0 %v167_v54, %s770_s6  ;;  %367 = vrot.lane.b32.xlu1 %v359_v55, %s769_s30  ;;  %v878_v5 = vmul.bf16 %v866_v61, %v813_v18  ;;  %v366_v42 = vrot.slane %v352_v30, %v808_v11  ;;  %v424_v49 = vcombine.low %v884_v8, %v884_v8 }
  0x8b   :  { %v86_v1 = vrot.slane %v84_v57, 4  ;;  %v344_v2 = vrot.slane %v341_v58, 4  ;;  %v160_v33 = vrot.slane %v153_v22, %v808_v11  ;;  %v386_v43 = vrot.slane %v379_v32, %v808_v11 }
  0x8c   :  { %v292_v18 = vrot.slane %v878_v5, %v808_v11  ;;  %v254_v51 = vrot.slane %v240_v41, %v808_v11  ;;  %v213_v52 = vrot.slane %v206_v40, %v808_v11  ;;  %v285_v55 = vcombine.high %v878_v5, %v878_v5 }
  0x8d   :  { %v88_v6 = vsel %vm87_vm5, %v85_v60, %v86_v1  ;;  %v486_v56 = vmul.bf16 %v820_v21, %v866_v61  ;;  %v774_v21 = vmov 0  }
  0x8e   :  { %v343_v3 = vpop.permute.xlu0 %342  ;;  %v188_v4 = vpop.permute.xlu1 %187  ;;  %396 = vrot.lane.b32.xlu0 %v393_v0, %s770_s6  ;;  %255 = vrot.lane.b32.xlu1 %v247_v59, %s771_s7  ;;  %v90_v9 = vsel %vm89_vm6, %v82_v50, %v88_v6  ;;  %v451_v50 = vcombine.high %v872_v63, %v872_v63  ;;  %v299_v60 = vrot.slane %v285_v55, %v808_v11 }
  0x8f   :  { %v345_v7 = vrot.slane %v343_v3, 4  ;;  %92 = vst [vmem:[#allocation2] sm:$0xcc] %v90_v9  ;;  %v191_v14 = vrot.slane %v188_v4, 4  ;;  %v488_v59 = vcombine.high %v486_v56, %v486_v56  ;;  %v495_v62 = vrot.slane %v486_v56, %v808_v11  ;;  %623 = vmatprep.mubr.bf16.mxu0 %v774_v21  ;;  %664 = vmatprep.mubr.bf16.mxu1 %v774_v21 }
  0x90   :  { %v465_v57 = vrot.slane %v451_v50, %v808_v11 }
  0x91   :  { %v346_v13 = vsel %vm87_vm5, %v344_v2, %v345_v7  ;;  %v502_v63 = vrot.slane %v488_v59, %v808_v11 }
  0x92   :  { %v347_v15 = vsel %vm89_vm6, %v341_v58, %v346_v13  ;;  %v190_v16 = vpop.permute.xlu0 %189  ;;  %v267_v17 = vpop.permute.xlu1 %266  ;;  %223 = vrot.lane.b32.xlu0 %v220_v10, %s772_s8  ;;  %466 = vrot.lane.b32.xlu1 %v458_v12, %s771_s7  ;;  %v431_v58 = vrot.slane %v424_v49, %v808_v11 }
  0x93   :  { %349 = vst [vmem:[#allocation2 + $0x8] sm:$0xcc] %v347_v15  ;;  %v192_v19 = vrot.slane %v190_v16, 4  ;;  %v270_v25 = vrot.slane %v267_v17, 4 }
  0x95   :  { %v193_v24 = vsel %vm87_vm5, %v191_v14, %v192_v19 }
  0x96   :  { %v195_v26 = vsel %vm194_vm7, %v188_v4, %v193_v24  ;;  %v269_v27 = vpop.permute.xlu0 %268  ;;  %v413_v28 = vpop.permute.xlu1 %412  ;;  %441 = vrot.lane.b32.xlu0 %v438_v23, %s772_s8  ;;  %300 = vrot.lane.b32.xlu1 %v292_v18, %s773_s9 }
  0x97   :  { %197 = vst [vmem:[#allocation2 + $0x20] sm:$0x33] %v195_v26  ;;  %v271_v29 = vrot.slane %v269_v27, 4  ;;  %v416_v35 = vrot.slane %v413_v28, 4 }
  0x99   :  { %v272_v34 = vsel %vm87_vm5, %v270_v25, %v271_v29 }
  0x9a   :  { %v274_v36 = vsel %vm273_vm8, %v267_v17, %v272_v34  ;;  %v415_v37 = vpop.permute.xlu0 %414  ;;  %v477_v38 = vpop.permute.xlu1 %476  ;;  %136 = vrot.lane.b32.xlu0 %v133_v31, %s769_s30  ;;  %168 = vrot.lane.b32.xlu1 %v160_v33, %s770_s6 }
  0x9b   :  { %276 = vst [vmem:[#allocation2 + $0x30] sm:$0xcc] %v274_v36  ;;  %v417_v39 = vrot.slane %v415_v37, 4  ;;  %v480_v45 = vrot.slane %v477_v38, 4 }
  0x9d   :  { %v418_v44 = vsel %vm87_vm5, %v416_v35, %v417_v39 }
  0x9e   :  { %v419_v46 = vsel %vm194_vm7, %v413_v28, %v418_v44  ;;  %v479_v47 = vpop.permute.xlu0 %478  ;;  %369 = vrot.lane.b32.xlu0 %v366_v42, %s769_s30  ;;  %394 = vrot.lane.b32.xlu1 %v386_v43, %s770_s6 }
  0x9f   :  { %421 = vst [vmem:[#allocation2 + $0x28] sm:$0x33] %v419_v46  ;;  %v481_v48 = vrot.slane %v479_v47, 4 }
  0xa1   :  { %v482_v53 = vsel %vm87_vm5, %v480_v45, %v481_v48 }
  0xa2   :  { %v483_v54 = vsel %vm273_vm8, %v477_v38, %v482_v53  ;;  %257 = vrot.lane.b32.xlu0 %v254_v51, %s771_s7  ;;  %221 = vrot.lane.b32.xlu1 %v213_v52, %s772_s8 }
  0xa3   :  { %485 = vst [vmem:[#allocation2 + $0x38] sm:$0xcc] %v483_v54 }
  0xa6   :  { %468 = vrot.lane.b32.xlu0 %v465_v57, %s771_s7  ;;  %439 = vrot.lane.b32.xlu1 %v431_v58, %s772_s8 }
  0xaa   :  { %302 = vrot.lane.b32.xlu0 %v299_v60, %s773_s9  ;;  %503 = vrot.lane.b32.xlu1 %v495_v62, %s773_s9 }
  0xae   :  { %505 = vrot.lane.b32.xlu0 %v502_v63, %s773_s9 }
  0xf8   :  { %v135_v61 = vpop.permute.xlu1 %134 }
  0xf9   :  { %v138_v11 = vrot.slane %v135_v61, 4 }
  0xfc   :  { %v171_v0 = vpop.permute.xlu0 %170  ;;  %v368_v1 = vpop.permute.xlu1 %367 }
  0xfd   :  { %v173_v10 = vrot.slane %v171_v0, 4  ;;  %v371_v20 = vrot.slane %v368_v1, 4 }
 0x100   :  { %v397_v2 = vpop.permute.xlu0 %396  ;;  %v256_v3 = vpop.permute.xlu1 %255 }
 0x101   :  { %v399_v22 = vrot.slane %v397_v2, 4  ;;  %v259_v31 = vrot.slane %v256_v3, 4 }
 0x104   :  { %v224_v4 = vpop.permute.xlu0 %223  ;;  %v467_v5 = vpop.permute.xlu1 %466 }
 0x105   :  { %v226_v32 = vrot.slane %v224_v4, 4  ;;  %v470_v43 = vrot.slane %v467_v5, 4 }
 0x108   :  { %v442_v6 = vpop.permute.xlu0 %441  ;;  %v951_v7 = vpop.permute.xlu1 %300 }
 0x109   :  { %v444_v44 = vrot.slane %v442_v6, 4  ;;  %v304_v54 = vrot.slane %v951_v7, 4 }
 0x10c   :  { %v137_v8 = vpop.permute.xlu0 %136  ;;  %v169_v9 = vpop.permute.xlu1 %168 }
 0x10d   :  { %v139_v12 = vrot.slane %v137_v8, 4  ;;  %v172_v13 = vrot.slane %v169_v9, 4 }
 0x10f   :  { %v140_v14 = vsel %vm87_vm5, %v138_v11, %v139_v12  ;;  %v174_v15 = vsel %vm87_vm5, %v172_v13, %v173_v10 }
 0x110   :  { %v142_v16 = vsel %vm141_vm9, %v135_v61, %v140_v14  ;;  %v176_v17 = vsel %vm175_vm10, %v169_v9, %v174_v15  ;;  %v370_v18 = vpop.permute.xlu0 %369  ;;  %v395_v19 = vpop.permute.xlu1 %394 }
 0x111   :  { %144 = vst [vmem:[#allocation2 + $0x10] sm:$0x33] %v142_v16  ;;  %178 = vst [vmem:[#allocation2 + $0x10] sm:$0xcc] %v176_v17  ;;  %v372_v23 = vrot.slane %v370_v18, 4  ;;  %v398_v24 = vrot.slane %v395_v19, 4 }
 0x113   :  { %v373_v25 = vsel %vm87_vm5, %v371_v20, %v372_v23  ;;  %v400_v26 = vsel %vm87_vm5, %v398_v24, %v399_v22 }
 0x114   :  { %v374_v27 = vsel %vm141_vm9, %v368_v1, %v373_v25  ;;  %v401_v28 = vsel %vm175_vm10, %v395_v19, %v400_v26  ;;  %v258_v29 = vpop.permute.xlu0 %257  ;;  %v222_v30 = vpop.permute.xlu1 %221 }
 0x115   :  { %376 = vst [vmem:[#allocation2 + $0x18] sm:$0x33] %v374_v27  ;;  %403 = vst [vmem:[#allocation2 + $0x18] sm:$0xcc] %v401_v28  ;;  %v260_v33 = vrot.slane %v258_v29, 4  ;;  %v225_v34 = vrot.slane %v222_v30, 4 }
 0x117   :  { %v261_v35 = vsel %vm87_vm5, %v259_v31, %v260_v33  ;;  %v227_v36 = vsel %vm87_vm5, %v225_v34, %v226_v32 }
 0x118   :  { %v263_v37 = vsel %vm262_vm11, %v256_v3, %v261_v35  ;;  %v229_v38 = vsel %vm228_vm12, %v222_v30, %v227_v36  ;;  %v469_v39 = vpop.permute.xlu0 %468  ;;  %v440_v40 = vpop.permute.xlu1 %439  ;;  %v744_v41 = vld [vmem:[#allocation2 + $0x4] ss:$16 sps:$4 sm:$0xff]   ;;  %v746_v42 = vld [vmem:[#allocation2] ss:$16 sps:$4 sm:$0xff]  }
 0x119   :  { %265 = vst [vmem:[#allocation2 + $0x30] sm:$0x33] %v263_v37  ;;  %231 = vst [vmem:[#allocation2 + $0x20] sm:$0xcc] %v229_v38  ;;  %v471_v45 = vrot.slane %v469_v39, 4  ;;  %v443_v46 = vrot.slane %v440_v40, 4  ;;  %591 = vmatprep.subr.bf16.mxu0 %v744_v41 }
 0x11a   :  { %592 = vmatpush1.bf16.msra.mxu0 %v746_v42 }
 0x11b   :  { %v472_v47 = vsel %vm87_vm5, %v470_v43, %v471_v45  ;;  %v445_v48 = vsel %vm87_vm5, %v443_v46, %v444_v44 }
 0x11c   :  { %v473_v49 = vsel %vm262_vm11, %v467_v5, %v472_v47  ;;  %v446_v50 = vsel %vm228_vm12, %v440_v40, %v445_v48  ;;  %v303_v51 = vpop.permute.xlu0 %302  ;;  %v747_v52 = vld [vmem:[#allocation2 + $0xc] ss:$16 sps:$4 sm:$0xff]   ;;  %v749_v53 = vld [vmem:[#allocation2 + $0x8] ss:$16 sps:$4 sm:$0xff]   ;;  %v504_v56 = vpop.permute.xlu1 %503 }
 0x11d   :  { %475 = vst [vmem:[#allocation2 + $0x38] sm:$0x33] %v473_v49  ;;  %448 = vst [vmem:[#allocation2 + $0x28] sm:$0xcc] %v446_v50  ;;  %v305_v55 = vrot.slane %v303_v51, 4  ;;  %632 = vmatprep.subr.bf16.mxu1 %v747_v52  ;;  %v507_v62 = vrot.slane %v504_v56, 4 }
 0x11e   :  { %633 = vmatpush1.bf16.msra.mxu1 %v749_v53 }
 0x11f   :  { %v306_v57 = vsel %vm87_vm5, %v304_v54, %v305_v55 }
 0x120   :  { %v308_v58 = vsel %vm307_vm13, %v951_v7, %v306_v57  ;;  %v506_v59 = vpop.permute.xlu0 %505  ;;  %v750_v60 = vld [vmem:[#allocation2 + $0x24] ss:$16 sps:$4 sm:$0xff]   ;;  %v752_v21 = vld [vmem:[#allocation2 + $0x20] ss:$16 sps:$4 sm:$0xff]  }
 0x121   :  { %310 = vst [vmem:[#allocation2 + $0x40] sm:$0x33] %v308_v58  ;;  %v508_v63 = vrot.slane %v506_v59, 4  ;;  %593 = vmatprep.subr.bf16.mxu0 %v750_v60  ;;  %v513_v7 = vld [vmem:[%s998_s1] sm:$0xf] }
 0x122   :  { %594 = vmatpush1.bf16.msra.mxu0 %v752_v21 }
 0x123   :  { %v509_v61 = vsel %vm87_vm5, %v507_v62, %v508_v63 }
 0x124   :  { %v510_v0 = vsel %vm307_vm13, %v504_v56, %v509_v61  ;;  %v753_v1 = vld [vmem:[#allocation2 + $0x2c] ss:$16 sps:$4 sm:$0xff]   ;;  %v755_v2 = vld [vmem:[#allocation2 + $0x28] ss:$16 sps:$4 sm:$0xff]  }
 0x125   :  { %512 = vst [vmem:[#allocation2 + $0x48] sm:$0x33] %v510_v0  ;;  %634 = vmatprep.subr.bf16.mxu1 %v753_v1 }
 0x126   :  { %635 = vmatpush1.bf16.msra.mxu1 %v755_v2 }
 0x128   :  { %v522_v3 = vld [vmem:[#allocation2 + $0x40] sm:$0x33] }
 0x129   :  { %v720_v4 = vcombine.high %v522_v3, %v522_v3  ;;  %v719_v5 = vcombine.low %v522_v3, %v522_v3 }
 0x12b   :  { %723 = vmatprep.subr.msk.bf16.mxu0 %vm578_vm14, %v720_v4  ;;  %v580_v6 = vsel %vm578_vm14, %v719_v5, 0 }
 0x12c   :  { %596 = vmatpush1.bf16.msra.mxu0 %v580_v6  ;;  %v523_v8 = vld [vmem:[#allocation2 + $0x48] sm:$0x33] }
 0x12d   :  { %v722_v9 = vcombine.high %v523_v8, %v523_v8  ;;  %v721_v11 = vcombine.low %v523_v8, %v523_v8 }
 0x12f   :  { %724 = vmatmul.mubr.msk.bf16.vlgmr.msra.gmra.mrb[0].mxu0 %vm574_vm15, %v513_v7  ;;  %725 = vmatprep.subr.msk.bf16.mxu1 %vm578_vm14, %v722_v9  ;;  %v586_v10 = vsel %vm578_vm14, %v721_v11, 0 }
 0x130   :  { %637 = vmatpush1.bf16.msra.mxu1 %v586_v10 }
 0x133   :  { %726 = vmatmul.mubr.msk.bf16.vlgmr.msra.gmra.mrb[0].mxu1 %vm574_vm15, %v513_v7 }
 0x202   :  { %v625_v12 = vpop.f32.mrb[0].mxu0 }
 0x203   :  { %673 = vst [vmem:[%s999_s3] sm:$0xff] %v625_v12  ;;  %v685_v13 = vmul.f32 %v625_v12, %v625_v12  ;;  %v627_v14 = vpop.f32.mrb[1].mxu0 }
 0x204   :  { %674 = vst [vmem:[%s999_s3 + $0x8] sm:$0xff] %v627_v14  ;;  %v678_v15 = vadd.f32 %v627_v14, %v625_v12  ;;  %v686_v16 = vmul.f32 %v627_v14, %v627_v14  ;;  %v629_v17 = vpop.f32.mrb[2].mxu0 }
 0x205   :  { %v630_v18 = vpop.f32.mrb[3].mxu0 }
 0x206   :  { %v666_v19 = vpop.f32.mrb[0].mxu1  ;;  %v689_v20 = vadd.f32 %v686_v16, %v685_v13 }
 0x207   :  { %727 = vst [vmem:[%s999_s3 + $0x10] sm:$0xff] %v666_v19  ;;  %v687_v22 = vmul.f32 %v666_v19, %v666_v19  ;;  %v668_v23 = vpop.f32.mrb[1].mxu1  ;;  %v679_v24 = vadd.f32 %v678_v15, %v666_v19 }
 0x208   :  { %728 = vst [vmem:[%s999_s3 + $0x18] sm:$0xff] %v668_v23  ;;  %v670_v25 = vpop.f32.mrb[2].mxu1  ;;  %v688_v26 = vmul.f32 %v668_v23, %v668_v23 }
 0x209   :  { %v671_v27 = vpop.f32.mrb[3].mxu1  ;;  %v680_v28 = vadd.f32 %v679_v24, %v668_v23  ;;  %v690_v29 = vadd.f32 %v689_v20, %v687_v22 }
 0x20b   :  { %681 = vadd.xlane.f32.xlu1 %v680_v28  ;;  %v691_v30 = vadd.f32 %v690_v29, %v688_v26 }
 0x20d   :  { %692 = vadd.xlane.f32.xlu0 %v691_v30 }
 0x298   :  { %v682_v31 = vpop.xlane.xlu1 %681 }
 0x299   :  { %684 = vst.msk [vmem:[%s1000_s4] sm:$0xff] %vm683_vm0, %v682_v31 }
 0x29a   :  { %v693_v32 = vpop.xlane.xlu0 %692 }
 0x29b   :  { %694 = vst.msk [vmem:[%s1001_s5] sm:$0xff] %vm683_vm0, %v693_v32 }

// kernel: conv_ode_func_forward.7
= control target key start
LH: loop header
LB: loop body
LE: loop exit
PB: predicated region body
PF: predicated region fallthrough
CT: control target
= control target key end

     0   :  { %s414_s12 = smov 0   ;;  %s416_s13 = smov 0   ;;  %s453_s0 = inlined_call_operand.vmem [shape: f32[2,4,256], index: 0, kind: input, shape index: {}]   ;;  %s454_s1 = inlined_call_operand.vmem [shape: f32[4,1], index: 1, kind: input, shape index: {}]   ;;  %s455_s2 = inlined_call_operand.vmem [shape: f32[4,1], index: 2, kind: input, shape index: {}]   ;;  %s456_s3 = inlined_call_operand.vmem [shape: f32[2,4,256], index: 3, kind: output, shape index: {}]  }
   0x1   :  { %s418_s14 = smov 0  }
   0x2 LB: > { %s25_s15 = sadd.s32 1, %s386_s13  ;;  %p332_p0 = scmp.ge.s32.totalorder %s390_s14, 1  ;;  %s390_s14 = sphi %s418_s14, %s13_s14   ;;  %s386_s13 = sphi %s416_s13, %s458_s13   ;;  %s382_s12 = sphi %s414_s12, %s457_s12  }
   0x3   : > { %p27_p1 = scmp.ge.s32.totalorder %s25_s15, 2  ;;  %p158_p2 = scmp.lt.s32.totalorder %s390_s14, 3 }
   0x5   : > { %s460_s15 = smov (%p27_p1, %s25_s15), 0  ;;  %p159_p3 = pnand %p332_p0, %p158_p2 }
   0x6   : > { %v211_v0 = vld [vmem:[%s454_s1] sm:$0xf] (!%p159_p3)  ;;  %v392_v1 = vmov (!%p159_p3), 0   ;;  %p191_p4 = scmp.lt.s32.totalorder (!%p159_p3), %s382_s12, 1  ;;  %v393_v3 = vmov (!%p159_p3), 839922192   ;;  %v219_v5 = vlaneseq (!%p159_p3) }
   0x7   : > { %162 = sbr.rel (%p159_p3) target bundleno = 147 (0x93), region = 32  ;;  %367 = vset.pattern.permute.xlu0 (!%p159_p3), %v392_v1  ;;  %v225_v2 = vld [vmem:[%s455_s2] sm:$0xf] (!%p159_p3)  ;;  %v217_v4 = vunpack.c.l.s4 (!%p159_p3), %v393_v3 }
   0x8   : > { %214 = vperm.xlu0 (!%p159_p3), %367, %v211_v0   ;;  %v220_v7 = vshrl.u32 (!%p159_p3), %v219_v5, 7 }
   0x9   : > { %v218_v6 = vunpack.c.0.s8 (!%p159_p3), %v217_v4 }
   0xb   : > { %v221_v8 = vsub.s32 (!%p159_p3), %v218_v6, %v220_v7 }
   0xc   : > { %228 = vperm.xlu0 (!%p159_p3), %367, %v225_v2  }
   0xe   : > { %s462_s12 = smov (!%p191_p4, %s382_s12), 1 }
   0xf   : > { %s339_s20 = sshll.u32 %s462_s12, 3 }
  0x10   : > { %s198_s23 = scalar_lea.vmem %s453_s0, %s339_s20  ;;  %s208_s26 = scalar_lea.vmem %s456_s3, %s339_s20 }
  0x11   : > { %v210_v11 = vld [vmem:[%s198_s23] sm:$0xff] }
  0x87   : > { %v215_v9 = vpop.permute.xlu0 %214 }
  0x88   : > { %v222_v10 = vrot.slane %v215_v9, %v221_v8 }
  0x8a   : > { %v224_v13 = vmul.f32 %v222_v10, %v210_v11 }
  0x8b   : > { %v229_v12 = vpop.permute.xlu0 %228 }
  0x8c   : > { %v236_v14 = vrot.slane %v229_v12, %v221_v8 }
  0x8e   : > { %v238_v15 = vadd.f32 %v236_v14, %v224_v13 }
  0x90   : > { %v239_v16 = vmax.f32 %v238_v15, 0.0 }
  0x92   : > { %240 = vst [vmem:[%s208_s26] sm:$0xff] %v239_v16 }
  0x93 PF: > { %s13_s14 = sadd.s32 1, %s390_s14   ;;  %s457_s12 = smov %s386_s13 }
  0x94   : > { %p10_p5 = scmp.ge.s32.totalorder %s13_s14, 4   ;;  %s458_s13 = smov %s460_s15 }
  0x96   :  { %12 = sbr.rel (!%p10_p5) target bundleno = 2 (0x2), region = 62 }

// kernel: conv_ode_func_forward.6
= control target key start
LH: loop header
LB: loop body
LE: loop exit
PB: predicated region body
PF: predicated region fallthrough
CT: control target
= control target key end

     0   :  { %v33_v0 = vlaneseq  ;;  %s618_s20 = smov 2   ;;  %s619_s21 = smov 18   ;;  %vm82_vm0 = vcmask 15360   ;;  %vm104_vm1 = vcmask 130048   ;;  %vm60_vm2 = vcmask 1043456   ;;  %s802_s2 = inlined_call_operand.vmem [shape: bf16[3,256], index: 2, kind: input, shape index: {}]   ;;  %s803_s0 = inlined_call_operand.vmem [shape: bf16[2,8,290], index: 0, kind: input, shape index: {}]   ;;  %s804_s1 = inlined_call_operand.vmem [shape: bf16[4,72], index: 1, kind: input, shape index: {}]   ;;  %s805_s3 = inlined_call_operand.vmem [shape: f32[2,4,256], index: 3, kind: output, shape index: {0}]   ;;  %s806_s4 = inlined_call_operand.vmem [shape: f32[1,4,1], index: 4, kind: output, shape index: {1}]   ;;  %s807_s5 = inlined_call_operand.vmem [shape: f32[1,4,1], index: 5, kind: output, shape index: {2}]  }
   0x1   :  { %v574_v1 = vld.sshfl [vmem:[%s802_s2] sm:$0x33 pattern:$0x76325410]  ;;  %s620_s22 = smov 16   ;;  %s621_s2 = smov 32  }
   0x2   :  { %v29_v2 = vcombine.high %v574_v1, %v574_v1  ;;  %v31_v3 = vpack.i.b16 %v574_v1, %v574_v1  ;;  %v34_v4 = vshrl.u32 %v33_v0, 7  ;;  %v672_v14 = vld [vmem:[%s803_s0] sm:$0xff]  ;;  %s622_s25 = smov 34   ;;  %s623_s26 = smov 127   ;;  %v678_v15 = vld [vmem:[%s803_s0 + $0x8] sm:$0xf] }
   0x3   :  { %v683_v16 = vld [vmem:[%s803_s0 + $0xc] sm:$0xff]  ;;  %v690_v17 = vld [vmem:[%s803_s0 + $0x14] sm:$0xf]  ;;  %s624_s8 = smov 111   ;;  %s625_s9 = smov 95   ;;  %vm137_vm3 = vcmask 146432  }
   0x4   :  { %v38_v5 = vpack.i.b16 %v29_v2, %v29_v2  ;;  %v68_v6 = vsub.s32 1, %v34_v4  ;;  %v35_v7 = vsub.s32 0, %v34_v4  ;;  %s626_s0 = smov 126   ;;  %s627_s10 = smov 112   ;;  %vm62_vm4 = vcmask 1039360  }
   0x5   :  { %s628_s11 = smov 110   ;;  %vm159_vm5 = vcmask 261120   ;;  %s629_s12 = smov 96   ;;  %vm192_vm6 = vcmask 277504   ;;  %v630_v4 = vmov 0   ;;  %vm97_vm7 = vcmask 1031168  }
   0x6   :  { %v69_v8 = vrot.slane %v31_v3, %v68_v6  ;;  %v73_v9 = vrot.slane %v38_v5, %v68_v6  ;;  %v36_v10 = vrot.slane %v31_v3, %v35_v7  ;;  %v43_v11 = vrot.slane %v38_v5, %v35_v7  ;;  %476 = vmatprep.mubr.bf16.mxu0 %v630_v4  ;;  %s631_s13 = smov 94  }
   0x7   :  { %517 = vmatprep.mubr.bf16.mxu1 %v630_v4  ;;  %vm119_vm8 = vcmask 916480   ;;  %vm130_vm9 = vcmask 908288   ;;  %vm152_vm10 = vcmask 900096   ;;  %vm185_vm11 = vcmask 777216  }
   0x8   :  { %v576_v12 = vcombine.low %v69_v8, %v73_v9  ;;  %v665_v13 = vcombine.low %v36_v10, %v43_v11  ;;  %vm174_vm12 = vcmask 785408   ;;  %vm207_vm13 = vcmask 769024  }
   0x9   :  { %vm427_vm14 = vcmask 588800   ;;  %vm546_vm15 = vcmask 3072  }
   0xa   :  { %79 = vrot.lane.b32.xlu0 %v576_v12, %s618_s20  ;;  %134 = vrot.lane.b32.xlu1 %v576_v12, %s619_s21  ;;  %v50_v39 = vmul.bf16 %v665_v13, %v672_v14  ;;  %v214_v47 = vmul.bf16 %v683_v16, %v665_v13 }
   0xe   :  { %101 = vrot.lane.b32.xlu0 %v665_v13, %s620_s22  ;;  %156 = vrot.lane.b32.xlu1 %v665_v13, %s621_s2 }
  0x12   :  { %189 = vrot.lane.b32.xlu0 %v576_v12, %s622_s25  ;;  %54 = vrot.lane.b32.xlu1 %v672_v14, %s623_s26 }
  0x16   :  { %56 = vrot.lane.b32.xlu0 %v678_v15, %s623_s26  ;;  %218 = vrot.lane.b32.xlu1 %v683_v16, %s623_s26 }
  0x1a   :  { %220 = vrot.lane.b32.xlu0 %v690_v17, %s623_s26  ;;  %123 = vrot.lane.b32.xlu1 %v672_v14, %s624_s8 }
  0x1e   :  { %125 = vrot.lane.b32.xlu0 %v678_v15, %s624_s8  ;;  %256 = vrot.lane.b32.xlu1 %v683_v16, %s624_s8 }
  0x22   :  { %258 = vrot.lane.b32.xlu0 %v690_v17, %s624_s8  ;;  %178 = vrot.lane.b32.xlu1 %v672_v14, %s625_s9 }
  0x26   :  { %180 = vrot.lane.b32.xlu0 %v678_v15, %s625_s9  ;;  %294 = vrot.lane.b32.xlu1 %v683_v16, %s625_s9 }
  0x2a   :  { %296 = vrot.lane.b32.xlu0 %v690_v17, %s625_s9 }
  0x7c   :  { %v80_v18 = vpop.permute.xlu0 %79  ;;  %v135_v19 = vpop.permute.xlu1 %134 }
  0x7d   :  { %v81_v20 = vrot.slane %v80_v18, 4  ;;  %v136_v35 = vrot.slane %v135_v19, 4 }
  0x7f   :  { %v83_v21 = vsel %vm82_vm0, %v81_v20, %v80_v18  ;;  %v87_v22 = vmul.bf16 %v81_v20, %v678_v15  ;;  %v229_v32 = vmul.bf16 %v690_v17, %v81_v20  ;;  %v138_v44 = vsel %vm137_vm3, %v136_v35, %v135_v19 }
  0x80   :  { %v86_v23 = vmul.bf16 %v83_v21, %v672_v14  ;;  %v102_v24 = vpop.permute.xlu0 %101  ;;  %v157_v25 = vpop.permute.xlu1 %156  ;;  %v228_v34 = vmul.bf16 %v683_v16, %v83_v21  ;;  %v142_v48 = vmul.bf16 %v136_v35, %v678_v15  ;;  %v141_v53 = vmul.bf16 %v138_v44, %v672_v14 }
  0x81   :  { %v103_v26 = vrot.slane %v102_v24, 4  ;;  %92 = vrot.lane.b32.xlu0 %v87_v22, %s626_s0  ;;  %v158_v55 = vrot.slane %v157_v25, 4  ;;  %v267_v58 = vmul.bf16 %v690_v17, %v136_v35  ;;  %v266_v59 = vmul.bf16 %v683_v16, %v138_v44 }
  0x82   :  { %90 = vrot.lane.b32.xlu1 %v86_v23, %s626_s0 }
  0x83   :  { %v105_v27 = vsel %vm104_vm1, %v103_v26, %v102_v24  ;;  %v109_v28 = vmul.bf16 %v103_v26, %v678_v15  ;;  %v243_v40 = vmul.bf16 %v690_v17, %v103_v26  ;;  %v160_v60 = vsel %vm159_vm5, %v158_v55, %v157_v25 }
  0x84   :  { %v108_v29 = vmul.bf16 %v105_v27, %v672_v14  ;;  %v190_v30 = vpop.permute.xlu0 %189  ;;  %v55_v31 = vpop.permute.xlu1 %54  ;;  %v242_v43 = vmul.bf16 %v683_v16, %v105_v27  ;;  %v164_v61 = vmul.bf16 %v158_v55, %v678_v15  ;;  %v163_v62 = vmul.bf16 %v160_v60, %v672_v14 }
  0x85   :  { %114 = vrot.lane.b32.xlu0 %v109_v28, %s627_s10  ;;  %v58_v33 = vrot.slane %v55_v31, 4  ;;  %v191_v63 = vrot.slane %v190_v30, 4  ;;  %v281_v0 = vmul.bf16 %v690_v17, %v158_v55  ;;  %v280_v1 = vmul.bf16 %v683_v16, %v160_v60 }
  0x86   :  { %112 = vrot.lane.b32.xlu1 %v108_v29, %s627_s10 }
  0x87   :  { %v193_v2 = vsel %vm192_vm6, %v191_v63, %v190_v30  ;;  %v197_v3 = vmul.bf16 %v191_v63, %v678_v15  ;;  %v305_v6 = vmul.bf16 %v690_v17, %v191_v63 }
  0x88   :  { %v57_v36 = vpop.permute.xlu0 %56  ;;  %v219_v37 = vpop.permute.xlu1 %218  ;;  %v196_v5 = vmul.bf16 %v193_v2, %v672_v14  ;;  %v304_v7 = vmul.bf16 %v683_v16, %v193_v2 }
  0x89   :  { %234 = vrot.lane.b32.xlu0 %v229_v32, %s626_s0  ;;  %v59_v38 = vrot.slane %v57_v36, 4  ;;  %v222_v41 = vrot.slane %v219_v37, 4 }
  0x8a   :  { %232 = vrot.lane.b32.xlu1 %v228_v34, %s626_s0 }
  0x8b   :  { %v61_v42 = vsel %vm60_vm2, %v58_v33, %v59_v38 }
  0x8c   :  { %v221_v45 = vpop.permute.xlu0 %220  ;;  %v63_v46 = vsel %vm62_vm4, %v55_v31, %v61_v42  ;;  %v124_v9 = vpop.permute.xlu1 %123 }
  0x8d   :  { %248 = vrot.lane.b32.xlu0 %v243_v40, %s627_s10  ;;  %v223_v49 = vrot.slane %v221_v45, 4  ;;  %v580_v50 = vcombine.high %v50_v39, %v63_v46  ;;  %v579_v51 = vcombine.low %v50_v39, %v63_v46  ;;  %v127_v35 = vrot.slane %v124_v9, 4 }
  0x8e   :  { %246 = vrot.lane.b32.xlu1 %v242_v43, %s627_s10 }
  0x8f   :  { %444 = vmatprep.subr.bf16.mxu0 %v580_v50  ;;  %v224_v52 = vsel %vm60_vm2, %v222_v41, %v223_v49 }
  0x90   :  { %445 = vmatpush1.bf16.msra.mxu0 %v579_v51  ;;  %v225_v54 = vsel %vm62_vm4, %v219_v37, %v224_v52  ;;  %v126_v8 = vpop.permute.xlu0 %125  ;;  %v729_v11 = vpop.permute.xlu1 %256 }
  0x91   :  { %147 = vrot.lane.b32.xlu0 %v142_v48, %s628_s11  ;;  %v582_v56 = vcombine.high %v214_v47, %v225_v54  ;;  %v581_v57 = vcombine.low %v214_v47, %v225_v54  ;;  %v128_v34 = vrot.slane %v126_v8, 4  ;;  %v260_v42 = vrot.slane %v729_v11, 4 }
  0x92   :  { %145 = vrot.lane.b32.xlu1 %v141_v53, %s628_s11 }
  0x93   :  { %485 = vmatprep.subr.bf16.mxu1 %v582_v56  ;;  %v129_v41 = vsel %vm60_vm2, %v127_v35, %v128_v34 }
  0x94   :  { %486 = vmatpush1.bf16.msra.mxu1 %v581_v57  ;;  %v259_v10 = vpop.permute.xlu0 %258  ;;  %v733_v13 = vpop.permute.xlu1 %178  ;;  %v131_v53 = vsel %vm130_vm9, %v124_v9, %v129_v41 }
  0x95   :  { %272 = vrot.lane.b32.xlu0 %v267_v58, %s628_s11  ;;  %v261_v45 = vrot.slane %v259_v10, 4  ;;  %v182_v54 = vrot.slane %v733_v13, 4 }
  0x96   :  { %270 = vrot.lane.b32.xlu1 %v266_v59, %s628_s11 }
  0x97   :  { %v262_v57 = vsel %vm60_vm2, %v260_v42, %v261_v45 }
  0x98   :  { %v731_v12 = vpop.permute.xlu0 %180  ;;  %v737_v14 = vpop.permute.xlu1 %294 }
  0x99   :  { %169 = vrot.lane.b32.xlu0 %v164_v61, %s629_s12  ;;  %v183_v58 = vrot.slane %v731_v12, 4 }
  0x9a   :  { %167 = vrot.lane.b32.xlu1 %v163_v62, %s629_s12 }
  0x9b   :  { %v184_v4 = vsel %vm60_vm2, %v182_v54, %v183_v58 }
  0x9c   :  { %v735_v15 = vpop.permute.xlu0 %296 }
  0x9d   :  { %286 = vrot.lane.b32.xlu0 %v281_v0, %s629_s12  ;;  %v299_v9 = vrot.slane %v735_v15, 4 }
  0x9e   :  { %284 = vrot.lane.b32.xlu1 %v280_v1, %s629_s12  ;;  %v263_v1 = vsel %vm130_vm9, %v729_v11, %v262_v57 }
  0xa1   :  { %202 = vrot.lane.b32.xlu0 %v197_v3, %s631_s13 }
  0xa2   :  { %200 = vrot.lane.b32.xlu1 %v196_v5, %s631_s13  ;;  %v298_v5 = vrot.slane %v737_v14, 4 }
  0xa5   :  { %310 = vrot.lane.b32.xlu0 %v305_v6, %s631_s13 }
  0xa6   :  { %308 = vrot.lane.b32.xlu1 %v304_v7, %s631_s13 }
  0xf3   :  { %v93_v18 = vpop.permute.xlu0 %92 }
  0xf4   :  { %v91_v19 = vpop.permute.xlu1 %90  ;;  %v95_v17 = vrot.slane %v93_v18, 4 }
  0xf5   :  { %v94_v20 = vrot.slane %v91_v19, 4 }
  0xf7   :  { %v115_v16 = vpop.permute.xlu0 %114  ;;  %v96_v23 = vsel %vm60_vm2, %v94_v20, %v95_v17  ;;  %v186_v17 = vsel %vm185_vm11, %v733_v13, %v184_v4 }
  0xf8   :  { %v117_v21 = vrot.slane %v115_v16, 4  ;;  %v113_v22 = vpop.permute.xlu1 %112  ;;  %v98_v27 = vsel %vm97_vm7, %v91_v19, %v96_v23 }
  0xf9   :  { %v116_v24 = vrot.slane %v113_v22, 4 }
  0xfb   :  { %v118_v25 = vsel %vm60_vm2, %v116_v24, %v117_v21  ;;  %v235_v26 = vpop.permute.xlu0 %234 }
  0xfc   :  { %v120_v28 = vsel %vm119_vm8, %v113_v22, %v118_v25  ;;  %v233_v29 = vpop.permute.xlu1 %232  ;;  %v237_v32 = vrot.slane %v235_v26, 4  ;;  %v300_v22 = vsel %vm60_vm2, %v298_v5, %v299_v9 }
  0xfd   :  { %v583_v30 = vcombine.low %v98_v27, %v120_v28  ;;  %v584_v31 = vcombine.high %v98_v27, %v120_v28  ;;  %v236_v33 = vrot.slane %v233_v29, 4  ;;  %v301_v27 = vsel %vm185_vm11, %v737_v14, %v300_v22 }
  0xff   :  { %v249_v36 = vpop.permute.xlu0 %248  ;;  %446 = vmatprep.subr.bf16.mxu0 %v584_v31  ;;  %v238_v39 = vsel %vm60_vm2, %v236_v33, %v237_v32 }
 0x100   :  { %v251_v37 = vrot.slane %v249_v36, 4  ;;  %v247_v38 = vpop.permute.xlu1 %246  ;;  %447 = vmatpush1.bf16.msra.mxu0 %v583_v30  ;;  %v239_v46 = vsel %vm97_vm7, %v233_v29, %v238_v39 }
 0x101   :  { %v250_v40 = vrot.slane %v247_v38, 4 }
 0x103   :  { %v252_v43 = vsel %vm60_vm2, %v250_v40, %v251_v37  ;;  %v148_v44 = vpop.permute.xlu0 %147 }
 0x104   :  { %v253_v47 = vsel %vm119_vm8, %v247_v38, %v252_v43  ;;  %v150_v48 = vrot.slane %v148_v44, 4  ;;  %v146_v49 = vpop.permute.xlu1 %145  ;;  %v318_v43 = vld [vmem:[%s804_s1] sm:$0x3] }
 0x105   :  { %v585_v50 = vcombine.low %v239_v46, %v253_v47  ;;  %v586_v51 = vcombine.high %v239_v46, %v253_v47  ;;  %v149_v52 = vrot.slane %v146_v49, 4 }
 0x107   :  { %v151_v55 = vsel %vm60_vm2, %v149_v52, %v150_v48  ;;  %v273_v56 = vpop.permute.xlu0 %272  ;;  %487 = vmatprep.subr.bf16.mxu1 %v586_v51 }
 0x108   :  { %v153_v59 = vsel %vm152_vm10, %v146_v49, %v151_v55  ;;  %v275_v60 = vrot.slane %v273_v56, 4  ;;  %488 = vmatpush1.bf16.msra.mxu1 %v585_v50  ;;  %v271_v61 = vpop.permute.xlu1 %270 }
 0x109   :  { %v587_v62 = vcombine.low %v131_v53, %v153_v59  ;;  %v588_v63 = vcombine.high %v131_v53, %v153_v59  ;;  %v274_v0 = vrot.slane %v271_v61, 4 }
 0x10b   :  { %v276_v2 = vsel %vm60_vm2, %v274_v0, %v275_v60  ;;  %v170_v3 = vpop.permute.xlu0 %169  ;;  %448 = vmatprep.subr.bf16.mxu0 %v588_v63 }
 0x10c   :  { %v277_v6 = vsel %vm152_vm10, %v271_v61, %v276_v2  ;;  %v172_v7 = vrot.slane %v170_v3, 4  ;;  %v168_v8 = vpop.permute.xlu1 %167  ;;  %449 = vmatpush1.bf16.msra.mxu0 %v587_v62 }
 0x10d   :  { %v589_v10 = vcombine.low %v263_v1, %v277_v6  ;;  %v590_v12 = vcombine.high %v263_v1, %v277_v6  ;;  %v171_v11 = vrot.slane %v168_v8, 4 }
 0x10f   :  { %v173_v18 = vsel %vm60_vm2, %v171_v11, %v172_v7  ;;  %v287_v19 = vpop.permute.xlu0 %286  ;;  %489 = vmatprep.subr.bf16.mxu1 %v590_v12 }
 0x110   :  { %v175_v20 = vsel %vm174_vm12, %v168_v8, %v173_v18  ;;  %v289_v16 = vrot.slane %v287_v19, 4  ;;  %490 = vmatpush1.bf16.msra.mxu1 %v589_v10  ;;  %v285_v21 = vpop.permute.xlu1 %284 }
 0x111   :  { %v591_v23 = vcombine.low %v175_v20, %v186_v17  ;;  %v592_v24 = vcombine.high %v175_v20, %v186_v17  ;;  %v288_v15 = vrot.slane %v285_v21, 4 }
 0x113   :  { %v290_v25 = vsel %vm60_vm2, %v288_v15, %v289_v16  ;;  %v203_v26 = vpop.permute.xlu0 %202  ;;  %450 = vmatprep.subr.bf16.mxu0 %v592_v24 }
 0x114   :  { %v291_v28 = vsel %vm174_vm12, %v285_v21, %v290_v25  ;;  %v205_v13 = vrot.slane %v203_v26, 4  ;;  %v201_v29 = vpop.permute.xlu1 %200  ;;  %451 = vmatpush1.bf16.msra.mxu0 %v591_v23 }
 0x115   :  { %v593_v30 = vcombine.low %v291_v28, %v301_v27  ;;  %v594_v31 = vcombine.high %v291_v28, %v301_v27  ;;  %v204_v32 = vrot.slane %v201_v29, 4 }
 0x117   :  { %v206_v33 = vsel %vm60_vm2, %v204_v32, %v205_v13  ;;  %v311_v34 = vpop.permute.xlu0 %310  ;;  %491 = vmatprep.subr.bf16.mxu1 %v594_v31 }
 0x118   :  { %v208_v35 = vsel %vm207_vm13, %v201_v29, %v206_v33  ;;  %v313_v36 = vrot.slane %v311_v34, 4  ;;  %492 = vmatpush1.bf16.msra.mxu1 %v593_v30  ;;  %v309_v37 = vpop.permute.xlu1 %308 }
 0x119   :  { %v595_v38 = vcombine.low %v208_v35, %v208_v35  ;;  %v596_v14 = vcombine.high %v208_v35, %v208_v35  ;;  %v312_v39 = vrot.slane %v309_v37, 4 }
 0x11b   :  { %v314_v40 = vsel %vm60_vm2, %v312_v39, %v313_v36  ;;  %599 = vmatprep.subr.msk.bf16.mxu0 %vm60_vm2, %v596_v14  ;;  %v433_v41 = vsel %vm60_vm2, %v595_v38, 0 }
 0x11c   :  { %v315_v42 = vsel %vm207_vm13, %v309_v37, %v314_v40  ;;  %453 = vmatpush1.bf16.msra.mxu0 %v433_v41 }
 0x11d   :  { %v597_v44 = vcombine.low %v315_v42, %v315_v42  ;;  %v598_v45 = vcombine.high %v315_v42, %v315_v42 }
 0x11f   :  { %600 = vmatmul.mubr.msk.bf16.vlgmr.msra.gmra.mrb[0].mxu0 %vm427_vm14, %v318_v43  ;;  %601 = vmatprep.subr.msk.bf16.mxu1 %vm60_vm2, %v598_v45  ;;  %v439_v46 = vsel %vm60_vm2, %v597_v44, 0 }
 0x120   :  { %494 = vmatpush1.bf16.msra.mxu1 %v439_v46 }
 0x123   :  { %602 = vmatmul.mubr.msk.bf16.vlgmr.msra.gmra.mrb[0].mxu1 %vm427_vm14, %v318_v43 }
 0x1f2   :  { %v478_v47 = vpop.f32.mrb[0].mxu0 }
 0x1f3   :  { %v537_v48 = vsel %vm60_vm2, %v478_v47, 0.0  ;;  %v548_v49 = vmul.f32 %v478_v47, %v478_v47  ;;  %v480_v50 = vpop.f32.mrb[1].mxu0 }
 0x1f4   :  { %v528_v51 = vcombine.low %v478_v47, %v480_v50  ;;  %v538_v52 = vsel %vm60_vm2, %v480_v50, 0.0  ;;  %v549_v53 = vmul.f32 %v480_v50, %v480_v50  ;;  %v482_v54 = vpop.f32.mrb[2].mxu0 }
 0x1f5   :  { %v552_v55 = vsel %vm60_vm2, %v548_v49, 0.0  ;;  %v539_v56 = vadd.f32 %v538_v52, %v537_v48  ;;  %v483_v57 = vpop.f32.mrb[3].mxu0 }
 0x1f6   :  { %530 = vst [vmem:[%s805_s3] sm:$0xff] %v528_v51  ;;  %v553_v58 = vsel %vm60_vm2, %v549_v53, 0.0  ;;  %v519_v59 = vpop.f32.mrb[0].mxu1 }
 0x1f7   :  { %v540_v60 = vsel %vm60_vm2, %v519_v59, 0.0  ;;  %v550_v61 = vmul.f32 %v519_v59, %v519_v59  ;;  %v521_v62 = vpop.f32.mrb[1].mxu1  ;;  %v554_v63 = vadd.f32 %v553_v58, %v552_v55 }
 0x1f8   :  { %v533_v0 = vcombine.low %v519_v59, %v521_v62  ;;  %v551_v1 = vmul.f32 %v521_v62, %v521_v62  ;;  %v523_v2 = vpop.f32.mrb[2].mxu1  ;;  %v541_v3 = vadd.f32 %v540_v60, %v539_v56  ;;  %v542_v4 = vsel %vm60_vm2, %v521_v62, 0.0 }
 0x1f9   :  { %v524_v5 = vpop.f32.mrb[3].mxu1  ;;  %v555_v6 = vsel %vm60_vm2, %v550_v61, 0.0 }
 0x1fa   :  { %603 = vst [vmem:[%s805_s3 + $0x8] sm:$0xff] %v533_v0  ;;  %v543_v7 = vadd.f32 %v542_v4, %v541_v3  ;;  %v556_v8 = vadd.f32 %v555_v6, %v554_v63  ;;  %v557_v9 = vsel %vm60_vm2, %v551_v1, 0.0 }
 0x1fc   :  { %544 = vadd.xlane.f32.xlu1 %v543_v7  ;;  %v558_v10 = vadd.f32 %v557_v9, %v556_v8 }
 0x1fe   :  { %559 = vadd.xlane.f32.xlu0 %v558_v10 }
 0x289   :  { %v545_v12 = vpop.xlane.xlu1 %544 }
 0x28a   :  { %547 = vst.msk [vmem:[%s806_s4] sm:$0xf] %vm546_vm15, %v545_v12 }
 0x28b   :  { %v560_v11 = vpop.xlane.xlu0 %559 }
 0x28c   :  { %561 = vst.msk [vmem:[%s807_s5] sm:$0xf] %vm546_vm15, %v560_v11 }

</bundles_post_ra>
